<compile_context>
chip_gen: v6e
topology: v6e:2x2x1
jax: 0.10.0
libtpu: 0.0.40
codegen_flags: <defaults>
</compile_context>

<pallas_src>
import numpy as np

import jax
import jax.numpy as jnp
from jax.experimental import pallas as pl
from jax.experimental.pallas import tpu as pltpu


# ------------------------------ Pallas kernel ------------------------------ #

def _encoder_kernel(x_ref, l1_ref, n1_ref, b1_ref, l2_ref, n2_ref, b2_ref,
                    l3_ref, n3_ref, b3_ref, p_ref, v_ref, bl1_ref, w2_ref,
                    bl2_ref, o_ref):
    """Whole encoder forward. All operands are small 2-D/3-D f32 arrays in VMEM."""

    def conv_relu(a, l_ref, n_ref, b_ref):
        # Out = relu( sum_i L_i @ A @ N_i + bias_row )
        acc = None
        for i in range(3):                      # 3 kernel rows, unrolled
            t = jnp.dot(l_ref[i], a, preferred_element_type=jnp.float32)
            t = jnp.dot(t, n_ref[i], preferred_element_type=jnp.float32)
            acc = t if acc is None else acc + t
        return jnp.maximum(acc + b_ref[...], 0.0)

    a = x_ref[...]                               # (B*28, 28)
    a = conv_relu(a, l1_ref, n1_ref, b1_ref)     # (B*14, 14*8)
    a = conv_relu(a, l2_ref, n2_ref, b2_ref)     # (B*7,  7*16)   (BN folded in)
    a = conv_relu(a, l3_ref, n3_ref, b3_ref)     # (B*3,  3*32)

    # Flatten (permutation folded into V) + Linear(288,128) + ReLU
    y = None
    for h in range(3):
        t = jnp.dot(p_ref[h], a, preferred_element_type=jnp.float32)   # (B, 96)
        t = jnp.dot(t, v_ref[h], preferred_element_type=jnp.float32)   # (B, 128)
        y = t if y is None else y + t
    y = jnp.maximum(y + bl1_ref[...], 0.0)       # (B, 128)

    # Linear(128, D)
    o_ref[...] = (jnp.dot(y, w2_ref[...], preferred_element_type=jnp.float32)
                  + bl2_ref[...]).astype(o_ref.dtype)


# ------------------------- operand (weight) packing ------------------------- #

def _row_select(B, H, OH, i, pad, stride):
    """L_i: (B*OH, B*H) 0/1 matrix selecting input row 2*oh+i-pad (0 if OOB)."""
    h = stride * np.arange(OH) + i - pad                       # (OH,)
    R = (h[:, None] == np.arange(H)[None, :]).astype(np.float32)
    return np.kron(np.eye(B, dtype=np.float32), R)


def _col_weight(w_row, W, OW, pad, stride):
    """N_i: (W*Cin, OW*Cout) = column-gather (incl. zero padding) x conv weights
    for one kernel row.  w_row: (Cout, Cin, KW)."""
    cout, cin, kw = w_row.shape
    wcol = stride * np.arange(OW)[:, None] + np.arange(kw)[None, :] - pad  # (OW,KW)
    valid = (wcol >= 0) & (wcol < W)
    S = np.zeros((W, OW, kw), np.float32)
    o_idx, j_idx = np.nonzero(valid)
    S[wcol[o_idx, j_idx], o_idx, j_idx] = 1.0
    # N[w, ci, ow, co] = sum_j S[w, ow, j] * w_row[co, ci, j]
    N = jnp.einsum("woj,ncj->wcon", jnp.asarray(S), w_row)     # (W, Cin, OW, Cout)
    return N.reshape(W * cin, OW * cout)


def prepare_operands(params, batch, eps=1e-5):
    """One-time packing: fold BN into conv2, bake stride/padding gathers into
    constant matrices, fold Flatten into Linear1, pre-transpose Linear2."""
    B = batch

    # Eval-mode BatchNorm2d(16) folded into conv2 weight/bias.
    inv = params["bn_gamma"] / jnp.sqrt(params["bn_var"] + eps)
    w2_eff = params["w2"] * inv[:, None, None, None]
    b2_eff = (params["b2"] - params["bn_mean"]) * inv + params["bn_beta"]

    def conv_ops(w, b, H, W, OH, OW, pad, stride=2):
        cout, cin, kh, kw = w.shape
        L = np.stack([_row_select(B, H, OH, i, pad, stride) for i in range(kh)])
        N = jnp.stack([_col_weight(w[:, :, i, :], W, OW, pad, stride)
                       for i in range(kh)])
        brow = jnp.tile(b, OW).reshape(1, OW * cout)
        return jnp.asarray(L), N, brow

    L1, N1, c1b = conv_ops(params["w1"], params["b1"], 28, 28, 14, 14, pad=1)
    L2, N2, c2b = conv_ops(w2_eff,        b2_eff,       14, 14, 7, 7,   pad=1)
    L3, N3, c3b = conv_ops(params["w3"], params["b3"],  7,  7,  3, 3,   pad=0)

    # Flatten (PyTorch (C,H,W) order) + Linear(288,128) folded into 3 matmuls:
    #   y = sum_h (P_h @ Out3) @ V_h + bl1,   V_h[w*32+c, n] = Wl1[n, c*9+h*3+w]
    wl1 = params["wl1"]                                        # (128, 288)
    V = jnp.transpose(wl1.reshape(128, 32, 3, 3), (2, 3, 1, 0)).reshape(3, 96, 128)
    P = jnp.asarray(np.stack(
        [np.kron(np.eye(B, dtype=np.float32),
                 np.eye(3, dtype=np.float32)[i:i + 1, :]) for i in range(3)]))
    bl1 = params["bl1"].reshape(1, 128)
    W2t = params["wl2"].T                                      # (128, D), pre-transposed
    bl2 = params["bl2"].reshape(1, -1)

    return (L1, N1, c1b, L2, N2, c2b, L3, N3, c3b, P, V, bl1, W2t, bl2)


# ------------------------------ forward pass ------------------------------- #

def _estimate_flops(B, D):
    total = 0
    for oh, h, wc, owc in ((14, 28, 28, 112), (7, 14, 112, 112), (3, 7, 112, 96)):
        total += 3 * 2 * (B * oh * B * h * wc + B * oh * wc * owc)   # conv layers
    total += 3 * 2 * (B * (3 * B) * 96 + B * 96 * 128)               # flatten+lin1
    total += 2 * B * 128 * D                                         # lin2
    return total


def encoder_forward(ops, x):
    B = x.shape[0]
    assert x.shape[1:] == (1, 28, 28), x.shape
    x_mat = x.reshape(B * 28, 28)            # (B*H, W*C) with C=1: pure reshape
    D = ops[-1].shape[1]

    operands = (x_mat,) + tuple(ops)
    bytes_accessed = sum(int(np.prod(o.shape)) * 4 for o in operands) + B * D * 4
    vspec = pl.BlockSpec(memory_space=pltpu.MemorySpace.VMEM)

    return pl.pallas_call(
        _encoder_kernel,
        out_shape=jax.ShapeDtypeStruct((B, D), jnp.float32),
        in_specs=[vspec] * len(operands),
        out_specs=vspec,
        compiler_params=pltpu.CompilerParams(vmem_limit_bytes=16 * 1024 * 1024),
        cost_estimate=pl.CostEstimate(flops=_estimate_flops(B, D),
                                      transcendentals=0,
                                      bytes_accessed=bytes_accessed),
    )(*operands)


# ------------------------------ params / ref -------------------------------- #

def init_params(key, encoded_space_dim):
    ks = jax.random.split(key, 16)

    def rn(k, shape, s=0.1):
        return (s * jax.random.normal(k, shape)).astype(jnp.float32)

    p = {}
    p["w1"] = rn(ks[0], (8, 1, 3, 3));    p["b1"] = rn(ks[1], (8,))
    p["w2"] = rn(ks[2], (16, 8, 3, 3));   p["b2"] = rn(ks[3], (16,))
    p["bn_gamma"] = 1.0 + rn(ks[4], (16,))
    p["bn_beta"] = rn(ks[5], (16,))
    p["bn_mean"] = rn(ks[6], (16,))
    p["bn_var"] = jnp.abs(rn(ks[7], (16,))) + 1.0
    p["w3"] = rn(ks[8], (32, 16, 3, 3));  p["b3"] = rn(ks[9], (32,))
    p["wl1"] = rn(ks[10], (128, 288));    p["bl1"] = rn(ks[11], (128,))
    p["wl2"] = rn(ks[12], (encoded_space_dim, 128))
    p["bl2"] = rn(ks[13], (encoded_space_dim,))
    return p


def _reference_forward(params, x, eps=1e-5):
    """Pure-JAX (XLA) reference matching the PyTorch module, for validation."""
    def conv(h, w, b, stride, pad):
        y = jax.lax.conv_general_dilated(
            h, w, (stride, stride), [(pad, pad), (pad, pad)],
            dimension_numbers=("NCHW", "OIHW", "NCHW"))
        return y + b[None, :, None, None]

    h = jax.nn.relu(conv(x, params["w1"], params["b1"], 2, 1))
    h = conv(h, params["w2"], params["b2"], 2, 1)
    inv = params["bn_gamma"] / jnp.sqrt(params["bn_var"] + eps)
    h = (h - params["bn_mean"][None, :, None, None]) * inv[None, :, None, None] \
        + params["bn_beta"][None, :, None, None]
    h = jax.nn.relu(h)
    h = jax.nn.relu(conv(h, params["w3"], params["b3"], 2, 0))
    h = h.reshape(h.shape[0], -1)
    h = jax.nn.relu(h @ params["wl1"].T + params["bl1"])
    return h @ params["wl2"].T + params["bl2"]


if __name__ == "__main__":
    encoded_space_dim = 8
    batch = 2
    key = jax.random.PRNGKey(0)
    kx, kp = jax.random.split(key)

    # MNIST-sized input is required by the architecture (flatten -> 3*3*32 = 288).
    x = jax.random.normal(kx, (batch, 1, 28, 28), dtype=jnp.float32)
    params = init_params(kp, encoded_space_dim)

    ops = prepare_operands(params, batch)        # one-time weight folding/packing
    fwd = jax.jit(encoder_forward)
    out = fwd(ops, x)
    jax.block_until_ready(out)

    assert out.shape == (batch, encoded_space_dim), out.shape
    assert out.dtype == jnp.float32

    ref = _reference_forward(params, x)
    err = float(jnp.max(jnp.abs(out - ref)))
    assert err < 2e-2, f"max abs error vs reference: {err}"
    print("KERNEL_OK")
</pallas_src>

<mosaic_0001>
module attributes {stable_mosaic.version = 11 : i64} {
  func.func @_encoder_kernel(%arg0: memref<56x28xf32, #tpu.memory_space<vmem>>, %arg1: memref<3x28x56xf32, #tpu.memory_space<vmem>>, %arg2: memref<3x28x112xf32, #tpu.memory_space<vmem>>, %arg3: memref<1x112xf32, #tpu.memory_space<vmem>>, %arg4: memref<3x14x28xf32, #tpu.memory_space<vmem>>, %arg5: memref<3x112x112xf32, #tpu.memory_space<vmem>>, %arg6: memref<1x112xf32, #tpu.memory_space<vmem>>, %arg7: memref<3x6x14xf32, #tpu.memory_space<vmem>>, %arg8: memref<3x112x96xf32, #tpu.memory_space<vmem>>, %arg9: memref<1x96xf32, #tpu.memory_space<vmem>>, %arg10: memref<3x2x6xf32, #tpu.memory_space<vmem>>, %arg11: memref<3x96x128xf32, #tpu.memory_space<vmem>>, %arg12: memref<1x128xf32, #tpu.memory_space<vmem>>, %arg13: memref<128x8xf32, #tpu.memory_space<vmem>>, %arg14: memref<1x8xf32, #tpu.memory_space<vmem>>, %arg15: memref<2x8xf32, #tpu.memory_space<vmem>>) attributes {dimension_semantics = [], scalar_prefetch = 0 : i64, scratch_operands = 0 : i64, tpu.core_type = #tpu.core_type<tc>} {
    %c0 = arith.constant 0 : index
    %c0_0 = arith.constant 0 : index
    %0 = vector.load %arg0[%c0, %c0_0] : memref<56x28xf32, #tpu.memory_space<vmem>>, vector<56x28xf32>
    %c0_1 = arith.constant 0 : index
    %c0_2 = arith.constant 0 : index
    %c0_3 = arith.constant 0 : index
    %1 = vector.load %arg1[%c0_1, %c0_2, %c0_3] : memref<3x28x56xf32, #tpu.memory_space<vmem>>, vector<1x28x56xf32>
    %2 = vector.shape_cast %1 : vector<1x28x56xf32> to vector<28x56xf32>
    %cst = arith.constant dense<0.000000e+00> : vector<28x28xf32>
    %3 = tpu.matmul %2, %0, %cst {dimension_numbers = #tpu.dot_dimension_numbers<[1], [0], [0], [1], [0, 0, 1, 1], [], []>} : vector<28x56xf32>, vector<56x28xf32>, vector<28x28xf32> -> vector<28x28xf32>
    %c0_4 = arith.constant 0 : index
    %c0_5 = arith.constant 0 : index
    %c0_6 = arith.constant 0 : index
    %4 = vector.load %arg2[%c0_4, %c0_5, %c0_6] : memref<3x28x112xf32, #tpu.memory_space<vmem>>, vector<1x28x112xf32>
    %5 = vector.shape_cast %4 : vector<1x28x112xf32> to vector<28x112xf32>
    %cst_7 = arith.constant dense<0.000000e+00> : vector<28x112xf32>
    %6 = tpu.matmul %3, %5, %cst_7 {dimension_numbers = #tpu.dot_dimension_numbers<[1], [0], [0], [1], [0, 0, 1, 1], [], []>} : vector<28x28xf32>, vector<28x112xf32>, vector<28x112xf32> -> vector<28x112xf32>
    %c1 = arith.constant 1 : index
    %c0_8 = arith.constant 0 : index
    %c0_9 = arith.constant 0 : index
    %7 = vector.load %arg1[%c1, %c0_8, %c0_9] : memref<3x28x56xf32, #tpu.memory_space<vmem>>, vector<1x28x56xf32>
    %8 = vector.shape_cast %7 : vector<1x28x56xf32> to vector<28x56xf32>
    %cst_10 = arith.constant dense<0.000000e+00> : vector<28x28xf32>
    %9 = tpu.matmul %8, %0, %cst_10 {dimension_numbers = #tpu.dot_dimension_numbers<[1], [0], [0], [1], [0, 0, 1, 1], [], []>} : vector<28x56xf32>, vector<56x28xf32>, vector<28x28xf32> -> vector<28x28xf32>
    %c1_11 = arith.constant 1 : index
    %c0_12 = arith.constant 0 : index
    %c0_13 = arith.constant 0 : index
    %10 = vector.load %arg2[%c1_11, %c0_12, %c0_13] : memref<3x28x112xf32, #tpu.memory_space<vmem>>, vector<1x28x112xf32>
    %11 = vector.shape_cast %10 : vector<1x28x112xf32> to vector<28x112xf32>
    %cst_14 = arith.constant dense<0.000000e+00> : vector<28x112xf32>
    %12 = tpu.matmul %9, %11, %cst_14 {dimension_numbers = #tpu.dot_dimension_numbers<[1], [0], [0], [1], [0, 0, 1, 1], [], []>} : vector<28x28xf32>, vector<28x112xf32>, vector<28x112xf32> -> vector<28x112xf32>
    %13 = arith.addf %6, %12 : vector<28x112xf32>
    %c2 = arith.constant 2 : index
    %c0_15 = arith.constant 0 : index
    %c0_16 = arith.constant 0 : index
    %14 = vector.load %arg1[%c2, %c0_15, %c0_16] : memref<3x28x56xf32, #tpu.memory_space<vmem>>, vector<1x28x56xf32>
    %15 = vector.shape_cast %14 : vector<1x28x56xf32> to vector<28x56xf32>
    %cst_17 = arith.constant dense<0.000000e+00> : vector<28x28xf32>
    %16 = tpu.matmul %15, %0, %cst_17 {dimension_numbers = #tpu.dot_dimension_numbers<[1], [0], [0], [1], [0, 0, 1, 1], [], []>} : vector<28x56xf32>, vector<56x28xf32>, vector<28x28xf32> -> vector<28x28xf32>
    %c2_18 = arith.constant 2 : index
    %c0_19 = arith.constant 0 : index
    %c0_20 = arith.constant 0 : index
    %17 = vector.load %arg2[%c2_18, %c0_19, %c0_20] : memref<3x28x112xf32, #tpu.memory_space<vmem>>, vector<1x28x112xf32>
    %18 = vector.shape_cast %17 : vector<1x28x112xf32> to vector<28x112xf32>
    %cst_21 = arith.constant dense<0.000000e+00> : vector<28x112xf32>
    %19 = tpu.matmul %16, %18, %cst_21 {dimension_numbers = #tpu.dot_dimension_numbers<[1], [0], [0], [1], [0, 0, 1, 1], [], []>} : vector<28x28xf32>, vector<28x112xf32>, vector<28x112xf32> -> vector<28x112xf32>
    %20 = arith.addf %13, %19 : vector<28x112xf32>
    %c0_22 = arith.constant 0 : index
    %c0_23 = arith.constant 0 : index
    %21 = vector.load %arg3[%c0_22, %c0_23] : memref<1x112xf32, #tpu.memory_space<vmem>>, vector<1x112xf32>
    %22 = vector.broadcast %21 : vector<1x112xf32> to vector<28x112xf32>
    %23 = arith.addf %20, %22 : vector<28x112xf32>
    %cst_24 = arith.constant 0.000000e+00 : f32
    %24 = vector.broadcast %cst_24 : f32 to vector<28x112xf32>
    %25 = arith.maximumf %23, %24 : vector<28x112xf32>
    %c0_25 = arith.constant 0 : index
    %c0_26 = arith.constant 0 : index
    %c0_27 = arith.constant 0 : index
    %26 = vector.load %arg4[%c0_25, %c0_26, %c0_27] : memref<3x14x28xf32, #tpu.memory_space<vmem>>, vector<1x14x28xf32>
    %27 = vector.shape_cast %26 : vector<1x14x28xf32> to vector<14x28xf32>
    %cst_28 = arith.constant dense<0.000000e+00> : vector<14x112xf32>
    %28 = tpu.matmul %27, %25, %cst_28 {dimension_numbers = #tpu.dot_dimension_numbers<[1], [0], [0], [1], [0, 0, 1, 1], [], []>} : vector<14x28xf32>, vector<28x112xf32>, vector<14x112xf32> -> vector<14x112xf32>
    %c0_29 = arith.constant 0 : index
    %c0_30 = arith.constant 0 : index
    %c0_31 = arith.constant 0 : index
    %29 = vector.load %arg5[%c0_29, %c0_30, %c0_31] : memref<3x112x112xf32, #tpu.memory_space<vmem>>, vector<1x112x112xf32>
    %30 = vector.shape_cast %29 : vector<1x112x112xf32> to vector<112x112xf32>
    %cst_32 = arith.constant dense<0.000000e+00> : vector<14x112xf32>
    %31 = tpu.matmul %28, %30, %cst_32 {dimension_numbers = #tpu.dot_dimension_numbers<[1], [0], [0], [1], [0, 0, 1, 1], [], []>} : vector<14x112xf32>, vector<112x112xf32>, vector<14x112xf32> -> vector<14x112xf32>
    %c1_33 = arith.constant 1 : index
    %c0_34 = arith.constant 0 : index
    %c0_35 = arith.constant 0 : index
    %32 = vector.load %arg4[%c1_33, %c0_34, %c0_35] : memref<3x14x28xf32, #tpu.memory_space<vmem>>, vector<1x14x28xf32>
    %33 = vector.shape_cast %32 : vector<1x14x28xf32> to vector<14x28xf32>
    %cst_36 = arith.constant dense<0.000000e+00> : vector<14x112xf32>
    %34 = tpu.matmul %33, %25, %cst_36 {dimension_numbers = #tpu.dot_dimension_numbers<[1], [0], [0], [1], [0, 0, 1, 1], [], []>} : vector<14x28xf32>, vector<28x112xf32>, vector<14x112xf32> -> vector<14x112xf32>
    %c1_37 = arith.constant 1 : index
    %c0_38 = arith.constant 0 : index
    %c0_39 = arith.constant 0 : index
    %35 = vector.load %arg5[%c1_37, %c0_38, %c0_39] : memref<3x112x112xf32, #tpu.memory_space<vmem>>, vector<1x112x112xf32>
    %36 = vector.shape_cast %35 : vector<1x112x112xf32> to vector<112x112xf32>
    %cst_40 = arith.constant dense<0.000000e+00> : vector<14x112xf32>
    %37 = tpu.matmul %34, %36, %cst_40 {dimension_numbers = #tpu.dot_dimension_numbers<[1], [0], [0], [1], [0, 0, 1, 1], [], []>} : vector<14x112xf32>, vector<112x112xf32>, vector<14x112xf32> -> vector<14x112xf32>
    %38 = arith.addf %31, %37 : vector<14x112xf32>
    %c2_41 = arith.constant 2 : index
    %c0_42 = arith.constant 0 : index
    %c0_43 = arith.constant 0 : index
    %39 = vector.load %arg4[%c2_41, %c0_42, %c0_43] : memref<3x14x28xf32, #tpu.memory_space<vmem>>, vector<1x14x28xf32>
    %40 = vector.shape_cast %39 : vector<1x14x28xf32> to vector<14x28xf32>
    %cst_44 = arith.constant dense<0.000000e+00> : vector<14x112xf32>
    %41 = tpu.matmul %40, %25, %cst_44 {dimension_numbers = #tpu.dot_dimension_numbers<[1], [0], [0], [1], [0, 0, 1, 1], [], []>} : vector<14x28xf32>, vector<28x112xf32>, vector<14x112xf32> -> vector<14x112xf32>
    %c2_45 = arith.constant 2 : index
    %c0_46 = arith.constant 0 : index
    %c0_47 = arith.constant 0 : index
    %42 = vector.load %arg5[%c2_45, %c0_46, %c0_47] : memref<3x112x112xf32, #tpu.memory_space<vmem>>, vector<1x112x112xf32>
    %43 = vector.shape_cast %42 : vector<1x112x112xf32> to vector<112x112xf32>
    %cst_48 = arith.constant dense<0.000000e+00> : vector<14x112xf32>
    %44 = tpu.matmul %41, %43, %cst_48 {dimension_numbers = #tpu.dot_dimension_numbers<[1], [0], [0], [1], [0, 0, 1, 1], [], []>} : vector<14x112xf32>, vector<112x112xf32>, vector<14x112xf32> -> vector<14x112xf32>
    %45 = arith.addf %38, %44 : vector<14x112xf32>
    %c0_49 = arith.constant 0 : index
    %c0_50 = arith.constant 0 : index
    %46 = vector.load %arg6[%c0_49, %c0_50] : memref<1x112xf32, #tpu.memory_space<vmem>>, vector<1x112xf32>
    %47 = vector.broadcast %46 : vector<1x112xf32> to vector<14x112xf32>
    %48 = arith.addf %45, %47 : vector<14x112xf32>
    %cst_51 = arith.constant 0.000000e+00 : f32
    %49 = vector.broadcast %cst_51 : f32 to vector<14x112xf32>
    %50 = arith.maximumf %48, %49 : vector<14x112xf32>
    %c0_52 = arith.constant 0 : index
    %c0_53 = arith.constant 0 : index
    %c0_54 = arith.constant 0 : index
    %51 = vector.load %arg7[%c0_52, %c0_53, %c0_54] : memref<3x6x14xf32, #tpu.memory_space<vmem>>, vector<1x6x14xf32>
    %52 = vector.shape_cast %51 : vector<1x6x14xf32> to vector<6x14xf32>
    %cst_55 = arith.constant dense<0.000000e+00> : vector<6x112xf32>
    %53 = tpu.matmul %52, %50, %cst_55 {dimension_numbers = #tpu.dot_dimension_numbers<[1], [0], [0], [1], [0, 0, 1, 1], [], []>} : vector<6x14xf32>, vector<14x112xf32>, vector<6x112xf32> -> vector<6x112xf32>
    %c0_56 = arith.constant 0 : index
    %c0_57 = arith.constant 0 : index
    %c0_58 = arith.constant 0 : index
    %54 = vector.load %arg8[%c0_56, %c0_57, %c0_58] : memref<3x112x96xf32, #tpu.memory_space<vmem>>, vector<1x112x96xf32>
    %55 = vector.shape_cast %54 : vector<1x112x96xf32> to vector<112x96xf32>
    %cst_59 = arith.constant dense<0.000000e+00> : vector<6x96xf32>
    %56 = tpu.matmul %53, %55, %cst_59 {dimension_numbers = #tpu.dot_dimension_numbers<[1], [0], [0], [1], [0, 0, 1, 1], [], []>} : vector<6x112xf32>, vector<112x96xf32>, vector<6x96xf32> -> vector<6x96xf32>
    %c1_60 = arith.constant 1 : index
    %c0_61 = arith.constant 0 : index
    %c0_62 = arith.constant 0 : index
    %57 = vector.load %arg7[%c1_60, %c0_61, %c0_62] : memref<3x6x14xf32, #tpu.memory_space<vmem>>, vector<1x6x14xf32>
    %58 = vector.shape_cast %57 : vector<1x6x14xf32> to vector<6x14xf32>
    %cst_63 = arith.constant dense<0.000000e+00> : vector<6x112xf32>
    %59 = tpu.matmul %58, %50, %cst_63 {dimension_numbers = #tpu.dot_dimension_numbers<[1], [0], [0], [1], [0, 0, 1, 1], [], []>} : vector<6x14xf32>, vector<14x112xf32>, vector<6x112xf32> -> vector<6x112xf32>
    %c1_64 = arith.constant 1 : index
    %c0_65 = arith.constant 0 : index
    %c0_66 = arith.constant 0 : index
    %60 = vector.load %arg8[%c1_64, %c0_65, %c0_66] : memref<3x112x96xf32, #tpu.memory_space<vmem>>, vector<1x112x96xf32>
    %61 = vector.shape_cast %60 : vector<1x112x96xf32> to vector<112x96xf32>
    %cst_67 = arith.constant dense<0.000000e+00> : vector<6x96xf32>
    %62 = tpu.matmul %59, %61, %cst_67 {dimension_numbers = #tpu.dot_dimension_numbers<[1], [0], [0], [1], [0, 0, 1, 1], [], []>} : vector<6x112xf32>, vector<112x96xf32>, vector<6x96xf32> -> vector<6x96xf32>
    %63 = arith.addf %56, %62 : vector<6x96xf32>
    %c2_68 = arith.constant 2 : index
    %c0_69 = arith.constant 0 : index
    %c0_70 = arith.constant 0 : index
    %64 = vector.load %arg7[%c2_68, %c0_69, %c0_70] : memref<3x6x14xf32, #tpu.memory_space<vmem>>, vector<1x6x14xf32>
    %65 = vector.shape_cast %64 : vector<1x6x14xf32> to vector<6x14xf32>
    %cst_71 = arith.constant dense<0.000000e+00> : vector<6x112xf32>
    %66 = tpu.matmul %65, %50, %cst_71 {dimension_numbers = #tpu.dot_dimension_numbers<[1], [0], [0], [1], [0, 0, 1, 1], [], []>} : vector<6x14xf32>, vector<14x112xf32>, vector<6x112xf32> -> vector<6x112xf32>
    %c2_72 = arith.constant 2 : index
    %c0_73 = arith.constant 0 : index
    %c0_74 = arith.constant 0 : index
    %67 = vector.load %arg8[%c2_72, %c0_73, %c0_74] : memref<3x112x96xf32, #tpu.memory_space<vmem>>, vector<1x112x96xf32>
    %68 = vector.shape_cast %67 : vector<1x112x96xf32> to vector<112x96xf32>
    %cst_75 = arith.constant dense<0.000000e+00> : vector<6x96xf32>
    %69 = tpu.matmul %66, %68, %cst_75 {dimension_numbers = #tpu.dot_dimension_numbers<[1], [0], [0], [1], [0, 0, 1, 1], [], []>} : vector<6x112xf32>, vector<112x96xf32>, vector<6x96xf32> -> vector<6x96xf32>
    %70 = arith.addf %63, %69 : vector<6x96xf32>
    %c0_76 = arith.constant 0 : index
    %c0_77 = arith.constant 0 : index
    %71 = vector.load %arg9[%c0_76, %c0_77] : memref<1x96xf32, #tpu.memory_space<vmem>>, vector<1x96xf32>
    %72 = vector.broadcast %71 : vector<1x96xf32> to vector<6x96xf32>
    %73 = arith.addf %70, %72 : vector<6x96xf32>
    %cst_78 = arith.constant 0.000000e+00 : f32
    %74 = vector.broadcast %cst_78 : f32 to vector<6x96xf32>
    %75 = arith.maximumf %73, %74 : vector<6x96xf32>
    %c0_79 = arith.constant 0 : index
    %c0_80 = arith.constant 0 : index
    %c0_81 = arith.constant 0 : index
    %76 = vector.load %arg10[%c0_79, %c0_80, %c0_81] : memref<3x2x6xf32, #tpu.memory_space<vmem>>, vector<1x2x6xf32>
    %77 = vector.shape_cast %76 : vector<1x2x6xf32> to vector<2x6xf32>
    %cst_82 = arith.constant dense<0.000000e+00> : vector<2x96xf32>
    %78 = tpu.matmul %77, %75, %cst_82 {dimension_numbers = #tpu.dot_dimension_numbers<[1], [0], [0], [1], [0, 0, 1, 1], [], []>} : vector<2x6xf32>, vector<6x96xf32>, vector<2x96xf32> -> vector<2x96xf32>
    %c0_83 = arith.constant 0 : index
    %c0_84 = arith.constant 0 : index
    %c0_85 = arith.constant 0 : index
    %79 = vector.load %arg11[%c0_83, %c0_84, %c0_85] : memref<3x96x128xf32, #tpu.memory_space<vmem>>, vector<1x96x128xf32>
    %80 = vector.shape_cast %79 : vector<1x96x128xf32> to vector<96x128xf32>
    %cst_86 = arith.constant dense<0.000000e+00> : vector<2x128xf32>
    %81 = tpu.matmul %78, %80, %cst_86 {dimension_numbers = #tpu.dot_dimension_numbers<[1], [0], [0], [1], [0, 0, 1, 1], [], []>} : vector<2x96xf32>, vector<96x128xf32>, vector<2x128xf32> -> vector<2x128xf32>
    %c1_87 = arith.constant 1 : index
    %c0_88 = arith.constant 0 : index
    %c0_89 = arith.constant 0 : index
    %82 = vector.load %arg10[%c1_87, %c0_88, %c0_89] : memref<3x2x6xf32, #tpu.memory_space<vmem>>, vector<1x2x6xf32>
    %83 = vector.shape_cast %82 : vector<1x2x6xf32> to vector<2x6xf32>
    %cst_90 = arith.constant dense<0.000000e+00> : vector<2x96xf32>
    %84 = tpu.matmul %83, %75, %cst_90 {dimension_numbers = #tpu.dot_dimension_numbers<[1], [0], [0], [1], [0, 0, 1, 1], [], []>} : vector<2x6xf32>, vector<6x96xf32>, vector<2x96xf32> -> vector<2x96xf32>
    %c1_91 = arith.constant 1 : index
    %c0_92 = arith.constant 0 : index
    %c0_93 = arith.constant 0 : index
    %85 = vector.load %arg11[%c1_91, %c0_92, %c0_93] : memref<3x96x128xf32, #tpu.memory_space<vmem>>, vector<1x96x128xf32>
    %86 = vector.shape_cast %85 : vector<1x96x128xf32> to vector<96x128xf32>
    %cst_94 = arith.constant dense<0.000000e+00> : vector<2x128xf32>
    %87 = tpu.matmul %84, %86, %cst_94 {dimension_numbers = #tpu.dot_dimension_numbers<[1], [0], [0], [1], [0, 0, 1, 1], [], []>} : vector<2x96xf32>, vector<96x128xf32>, vector<2x128xf32> -> vector<2x128xf32>
    %88 = arith.addf %81, %87 : vector<2x128xf32>
    %c2_95 = arith.constant 2 : index
    %c0_96 = arith.constant 0 : index
    %c0_97 = arith.constant 0 : index
    %89 = vector.load %arg10[%c2_95, %c0_96, %c0_97] : memref<3x2x6xf32, #tpu.memory_space<vmem>>, vector<1x2x6xf32>
    %90 = vector.shape_cast %89 : vector<1x2x6xf32> to vector<2x6xf32>
    %cst_98 = arith.constant dense<0.000000e+00> : vector<2x96xf32>
    %91 = tpu.matmul %90, %75, %cst_98 {dimension_numbers = #tpu.dot_dimension_numbers<[1], [0], [0], [1], [0, 0, 1, 1], [], []>} : vector<2x6xf32>, vector<6x96xf32>, vector<2x96xf32> -> vector<2x96xf32>
    %c2_99 = arith.constant 2 : index
    %c0_100 = arith.constant 0 : index
    %c0_101 = arith.constant 0 : index
    %92 = vector.load %arg11[%c2_99, %c0_100, %c0_101] : memref<3x96x128xf32, #tpu.memory_space<vmem>>, vector<1x96x128xf32>
    %93 = vector.shape_cast %92 : vector<1x96x128xf32> to vector<96x128xf32>
    %cst_102 = arith.constant dense<0.000000e+00> : vector<2x128xf32>
    %94 = tpu.matmul %91, %93, %cst_102 {dimension_numbers = #tpu.dot_dimension_numbers<[1], [0], [0], [1], [0, 0, 1, 1], [], []>} : vector<2x96xf32>, vector<96x128xf32>, vector<2x128xf32> -> vector<2x128xf32>
    %95 = arith.addf %88, %94 : vector<2x128xf32>
    %c0_103 = arith.constant 0 : index
    %c0_104 = arith.constant 0 : index
    %96 = vector.load %arg12[%c0_103, %c0_104] : memref<1x128xf32, #tpu.memory_space<vmem>>, vector<1x128xf32>
    %97 = vector.broadcast %96 : vector<1x128xf32> to vector<2x128xf32>
    %98 = arith.addf %95, %97 : vector<2x128xf32>
    %cst_105 = arith.constant 0.000000e+00 : f32
    %99 = vector.broadcast %cst_105 : f32 to vector<2x128xf32>
    %100 = arith.maximumf %98, %99 : vector<2x128xf32>
    %c0_106 = arith.constant 0 : index
    %c0_107 = arith.constant 0 : index
    %101 = vector.load %arg13[%c0_106, %c0_107] : memref<128x8xf32, #tpu.memory_space<vmem>>, vector<128x8xf32>
    %cst_108 = arith.constant dense<0.000000e+00> : vector<2x8xf32>
    %102 = tpu.matmul %100, %101, %cst_108 {dimension_numbers = #tpu.dot_dimension_numbers<[1], [0], [0], [1], [0, 0, 1, 1], [], []>} : vector<2x128xf32>, vector<128x8xf32>, vector<2x8xf32> -> vector<2x8xf32>
    %c0_109 = arith.constant 0 : index
    %c0_110 = arith.constant 0 : index
    %103 = vector.load %arg14[%c0_109, %c0_110] : memref<1x8xf32, #tpu.memory_space<vmem>>, vector<1x8xf32>
    %104 = vector.broadcast %103 : vector<1x8xf32> to vector<2x8xf32>
    %105 = arith.addf %102, %104 : vector<2x8xf32>
    %c0_111 = arith.constant 0 : index
    %c0_112 = arith.constant 0 : index
    %106 = vector.load %arg15[%c0_111, %c0_112] : memref<2x8xf32, #tpu.memory_space<vmem>>, vector<2x8xf32>
    tpu.vector_store %arg15[%c0_111, %c0_112], %105 {strides = array<i32>} : memref<2x8xf32, #tpu.memory_space<vmem>>, vector<2x8xf32>,
    return
  }
}

</mosaic_0001>

<bundles_post_ra>
// kernel: encoder_forward.1
= control target key start
LH: loop header
LB: loop body
LE: loop exit
PB: predicated region body
PF: predicated region fallthrough
CT: control target
= control target key end

     0   :  { %20 = vsyncpa [#allocation3], 0  ;;  %s4394_s0 = inlined_call_operand.vmem [shape: f32[56,28], index: 0, kind: input, shape index: {}]   ;;  %s4395_s1 = inlined_call_operand.vmem [shape: f32[3,28,56], index: 1, kind: input, shape index: {}]   ;;  %s4396_s2 = inlined_call_operand.hbm [shape: f32[3,28,112], index: 2, kind: input, shape index: {}]   ;;  %s4397_s3 = inlined_call_operand.vmem [shape: f32[1,112], index: 3, kind: input, shape index: {}]   ;;  %s4398_s4 = inlined_call_operand.hbm [shape: f32[3,14,28], index: 4, kind: input, shape index: {}]   ;;  %s4399_s5 = inlined_call_operand.vmem [shape: f32[3,112,112], index: 5, kind: input, shape index: {}]   ;;  %s4400_s6 = inlined_call_operand.vmem [shape: f32[1,112], index: 6, kind: input, shape index: {}]   ;;  %s4401_s7 = inlined_call_operand.hbm [shape: f32[3,6,14], index: 7, kind: input, shape index: {}]   ;;  %s4402_s8 = inlined_call_operand.vmem [shape: f32[3,112,96], index: 8, kind: input, shape index: {}]   ;;  %s4403_s9 = inlined_call_operand.hbm [shape: f32[1,96], index: 9, kind: input, shape index: {}]   ;;  %s4404_s10 = inlined_call_operand.hbm [shape: f32[3,2,6], index: 10, kind: input, shape index: {}]   ;;  %s4405_s11 = inlined_call_operand.vmem [shape: f32[3,96,128], index: 11, kind: input, shape index: {}]   ;;  %s4406_s12 = inlined_call_operand.hbm [shape: f32[1,128], index: 12, kind: input, shape index: {}]   ;;  %s4407_s13 = inlined_call_operand.vmem [shape: f32[128,8], index: 13, kind: input, shape index: {}]   ;;  %s4408_s14 = inlined_call_operand.hbm [shape: f32[1,8], index: 14, kind: input, shape index: {}]   ;;  %s4409_s15 = inlined_call_operand.hbm [shape: f32[2,8], index: 15, kind: output, shape index: {}]  }
   0x1   :  { %21 = vsyncpa [#allocation6], 0 }
   0x2   :  { %22 = vsyncpa [#allocation9], 0 }
   0x3   :  { %23 = vsyncpa [#allocation12], 0 }
   0x4   :  { %24 = vsyncpa [#allocation4], 0  ;;  %s3503_s18 = smov [#allocation5]   ;;  %s3504_s20 = smov [#allocation8]  }
   0x5   :  { %s48_s19 = sshll.u32 %s3503_s18, 4  ;;  %s79_s21 = sshll.u32 %s3504_s20, 4  ;;  %s49_s19 = int_to_ptr.vmem [resolvable:$true] %s48_s19  ;;  %s80_s21 = int_to_ptr.vmem [resolvable:$true] %s79_s21 }
   0x6   :  { %s3341_s22 = scalar_lea.vmem %s49_s19, 768  ;;  %p3346_p1 = scmp.lt.s32.totalorder %s49_s19, %s49_s19 }
   0x7   :  { %p3342_p0 = scmp.ne.s32.totalorder %s49_s19, %s3341_s22  ;;  %p3347_p2 = scmp.lt.s32.totalorder %s3341_s22, %s3341_s22 }
   0x9   :  { %p3348_p3 = por %p3347_p2, %p3346_p1 }
   0xb   :  { %p3349_p4 = pnand %p3348_p3, %p3342_p0 }
   0xd   :  { %3352 = shalt.err (!%p3349_p4)
}
   0xe   :  { %s3505_s23 = smov 128   ;;  %s3506_s24 = smov 8  }
   0xf   :  { %54 = dma.hbm_to_vmem [thread:$0]  %s4398_s4, 768, %s49_s19, [#allocation6], %s3505_s23, %s3505_s23, %s3506_s24  }
  0x10   :  { %s3361_s27 = scalar_lea.vmem %s80_s21, 16  ;;  %s3365_s28 = scalar_lea.vmem %s80_s21, 32 }
  0x11   :  { %p3362_p5 = scmp.ne.s32.totalorder %s80_s21, %s3361_s27  ;;  %p3366_p6 = scmp.lt.s32.totalorder %s80_s21, %s80_s21 }
  0x12   :  { %p3367_p7 = scmp.lt.s32.totalorder %s3365_s28, %s3361_s27 }
  0x14   :  { %p3368_p8 = por %p3367_p7, %p3366_p6 }
  0x16   :  { %p3369_p9 = pnand %p3368_p8, %p3362_p5 }
  0x18   :  { %3372 = shalt.err (!%p3369_p9)
}
  0x19   :  { %82 = dma.hbm_to_vmem [thread:$0]  %s4403_s9, 16, %s80_s21, [#allocation9]  }
  0x1a   :  { %s3507_s16 = smov [#allocation11]   ;;  %s3508_s18 = smov [#allocation2]  }
  0x1b   :  { %s103_s17 = sshll.u32 %s3507_s16, 4  ;;  %s34_s20 = sshll.u32 %s3508_s18, 4  ;;  %s104_s17 = int_to_ptr.vmem [resolvable:$true] %s103_s17  ;;  %s35_s20 = int_to_ptr.vmem [resolvable:$true] %s34_s20 }
  0x1c   :  { %s3381_s22 = scalar_lea.vmem %s104_s17, 16  ;;  %s3385_s4 = scalar_lea.vmem %s104_s17, 32 }
  0x1d   :  { %p3382_p10 = scmp.ne.s32.totalorder %s104_s17, %s3381_s22  ;;  %p3386_p11 = scmp.lt.s32.totalorder %s104_s17, %s104_s17 }
  0x1e   :  { %p3387_p12 = scmp.lt.s32.totalorder %s3385_s4, %s3381_s22 }
  0x20   :  { %p3388_p13 = por %p3387_p12, %p3386_p11 }
  0x22   :  { %p3389_p0 = pnand %p3388_p13, %p3382_p10 }
  0x24   :  { %3392 = shalt.err (!%p3389_p0)
}
  0x25   :  { %106 = dma.hbm_to_vmem [thread:$0]  %s4406_s12, 16, %s104_s17, [#allocation12]  }
  0x26   :  { %s3401_s26 = scalar_lea.vmem %s35_s20, 1536  ;;  %p3406_p2 = scmp.lt.s32.totalorder %s35_s20, %s35_s20 }
  0x27   :  { %p3402_p1 = scmp.ne.s32.totalorder %s35_s20, %s3401_s26  ;;  %p3407_p3 = scmp.lt.s32.totalorder %s3401_s26, %s3401_s26 }
  0x29   :  { %p3408_p4 = por %p3407_p3, %p3406_p2 }
  0x2b   :  { %p3409_p5 = pnand %p3408_p4, %p3402_p1 }
  0x2d   :  { %3412 = shalt.err (!%p3409_p5)
}
  0x2e   :  { %40 = dma.hbm_to_vmem [thread:$0]  %s4396_s2, 1536, %s35_s20, [#allocation3], %s3505_s23, %s3505_s23, %s3506_s24  }
  0x2f   :  { %s3509_s27 = smov [#allocation7]   ;;  %s3510_s29 = smov [#allocation10]  }
  0x30   :  { %s64_s28 = sshll.u32 %s3509_s27, 4  ;;  %s88_s30 = sshll.u32 %s3510_s29, 4  ;;  %s65_s28 = int_to_ptr.vmem [resolvable:$true] %s64_s28  ;;  %s89_s30 = int_to_ptr.vmem [resolvable:$true] %s88_s30 }
  0x31   :  { %s3421_s12 = scalar_lea.vmem %s65_s28, 384  ;;  %p3426_p7 = scmp.lt.s32.totalorder %s65_s28, %s65_s28 }
  0x32   :  { %p3422_p6 = scmp.ne.s32.totalorder %s65_s28, %s3421_s12  ;;  %p3427_p8 = scmp.lt.s32.totalorder %s3421_s12, %s3421_s12 }
  0x34   :  { %p3428_p9 = por %p3427_p8, %p3426_p7 }
  0x36   :  { %p3429_p10 = pnand %p3428_p9, %p3422_p6 }
  0x38   :  { %3432 = shalt.err (!%p3429_p10)
}
  0x39   :  { %70 = dma.hbm_to_vmem [thread:$0]  %s4401_s7, 384, %s65_s28, [#allocation6], %s3505_s23, %s3505_s23, %s3506_s24  }
  0x3a   :  { %s3441_s2 = scalar_lea.vmem %s89_s30, 96  ;;  %p3446_p12 = scmp.lt.s32.totalorder %s89_s30, %s89_s30 }
  0x3b   :  { %p3442_p11 = scmp.ne.s32.totalorder %s89_s30, %s3441_s2  ;;  %p3447_p13 = scmp.lt.s32.totalorder %s3441_s2, %s3441_s2 }
  0x3d   :  { %p3448_p0 = por %p3447_p13, %p3446_p12 }
  0x3f   :  { %p3449_p1 = pnand %p3448_p0, %p3442_p11 }
  0x41   :  { %3452 = shalt.err (!%p3449_p1)
}
  0x42   :  { %s3511_s18 = smov 32   ;;  %s3512_s20 = smov 2  }
  0x43   :  { %94 = dma.hbm_to_vmem [thread:$0]  %s4404_s10, 96, %s89_s30, [#allocation9], %s3511_s18, %s3511_s18, %s3512_s20  }
  0x44   :  { %s3513_s19 = smov [#allocation13]  }
  0x45   :  { %s115_s25 = sshll.u32 %s3513_s19, 4  ;;  %s116_s25 = int_to_ptr.vmem [resolvable:$true] %s115_s25 }
  0x46   :  { %s3461_s26 = scalar_lea.vmem %s116_s25, 16  ;;  %s3465_s9 = scalar_lea.vmem %s116_s25, 32 }
  0x47   :  { %p3462_p2 = scmp.ne.s32.totalorder %s116_s25, %s3461_s26  ;;  %p3466_p3 = scmp.lt.s32.totalorder %s116_s25, %s116_s25 }
  0x48   :  { %p3467_p4 = scmp.lt.s32.totalorder %s3465_s9, %s3461_s26 }
  0x4a   :  { %p3468_p5 = por %p3467_p4, %p3466_p3 }
  0x4c   :  { %p3469_p6 = pnand %p3468_p5, %p3462_p2 }
  0x4e   :  { %3472 = shalt.err (!%p3469_p6)
}
  0x4f   :  { %118 = dma.hbm_to_vmem [thread:$0]  %s4408_s14, 16, %s116_s25, [#allocation12]  }
  0x50   :  { %3493 = dma.done.wait [#allocation3], 1536  }
  0x51   :  { %3494 = vsyncadd [#allocation3], 4294965760 }
  0x52   :  { %3495 = dma.done.wait [#allocation6], 1152  }
  0x53   :  { %3496 = vsyncadd [#allocation6], 4294966144 }
  0x54   :  { %3497 = dma.done.wait [#allocation9], 112  }
  0x55   :  { %3498 = vsyncadd [#allocation9], 4294967184 }
  0x56   :  { %3499 = dma.done.wait [#allocation12], 32  }
  0x57   :  { %3500 = vsyncadd [#allocation12], 4294967264  ;;  %v3630_v0 = vld [vmem:[%s4394_s0 + $0x30] sm:$0xff]  ;;  %v3635_v1 = vld [vmem:[%s4394_s0 + $0x28] sm:$0xff]  ;;  %vm151_vm0 = vcmask 457728   ;;  %vm373_vm1 = vcmask 1043456  }
  0x58   :  { %2846 = vmatprep.subr.mxu0 %v3630_v0  ;;  %2866 = vmatprep.subr.mxu1 %v3630_v0  ;;  %v3644_v2 = vld [vmem:[%s4394_s0 + $0x20] sm:$0xff]  ;;  %v3653_v3 = vld [vmem:[%s4394_s0 + $0x18] sm:$0xff]  ;;  %v3662_v4 = vld [vmem:[%s4394_s0 + $0x10] sm:$0xff]  ;;  %vm360_vm2 = vcmask 228352   ;;  %vm987_vm3 = vcmask 916480   ;;  %vm3515_vm4 = vmmov 0  }
  0x59   :  { %2847 = vmatpush3.msra.mxu0 %v3630_v0  ;;  %2867 = vmatpush3.msra.mxu1 %v3630_v0  ;;  %v3671_v5 = vld [vmem:[%s4394_s0 + $0x8] sm:$0xff]  ;;  %v3680_v6 = vld [vmem:[%s4394_s0] sm:$0xff]  ;;  %v149_v11 = vld [vmem:[%s4395_s1 + $0x10] sm:$0xff]  ;;  %vm1348_vm5 = vcmask 1045504   ;;  %vm1344_vm6 = vcmask 113664   ;;  %vm1846_vm7 = vcmask 48128  }
  0x5a   :  { %2848 = vmatprep.subr.mxu0 %v3635_v1  ;;  %2868 = vmatprep.subr.mxu1 %v3635_v1  ;;  %v147_v7 = vld [vmem:[%s4395_s1] sm:$0xff]  ;;  %v148_v9 = vld [vmem:[%s4395_s1 + $0x8] sm:$0xff]  ;;  %v2460_v12 = vld [vmem:[%s4395_s1 + $0x30] sm:$0xff]  ;;  %vm2023_vm8 = vcmask 785408   ;;  %s3516_s9 = smov [#allocation14]   ;;  %vm2434_vm9 = vcmask 58368  }
  0x5b   :  { %2849 = vmatpush3.msra.mxu0 %v3635_v1  ;;  %2869 = vmatpush3.msra.mxu1 %v3635_v1  ;;  %v2458_v8 = vld [vmem:[%s4395_s1 + $0x20] sm:$0xff]  ;;  %v2459_v10 = vld [vmem:[%s4395_s1 + $0x28] sm:$0xff]  ;;  %v359_v13 = vld [vmem:[#allocation2 + $0x38] sm:$0xf]  ;;  %s2442_s7 = sshll.u32 %s3516_s9, 4  ;;  %s2443_s7 = int_to_ptr.vmem [resolvable:$true] %s2442_s7 }
  0x5c   :  { %2850 = vmatprep.subr.mxu0 %v3644_v2  ;;  %2870 = vmatprep.subr.mxu1 %v3644_v2  ;;  %v252_v14 = vld [vmem:[#allocation2 + $0x18] sm:$0xf]  ;;  %v358_v17 = vld [vmem:[#allocation2 + $0x30] sm:$0xff]  ;;  %v357_v19 = vld [vmem:[#allocation2 + $0x28] sm:$0xff]  ;;  %p3478_p8 = scmp.lt.s32.totalorder %s2443_s7, %s2443_s7 }
  0x5d   :  { %2851 = vmatpush3.msra.mxu0 %v3644_v2  ;;  %2871 = vmatpush3.msra.mxu1 %v3644_v2  ;;  %v150_v15 = vld [vmem:[%s4395_s1 + $0x18] sm:$0xf]  ;;  %v251_v18 = vld [vmem:[#allocation2 + $0x10] sm:$0xff]  ;;  %v250_v20 = vld [vmem:[#allocation2 + $0x8] sm:$0xff] }
  0x5e   :  { %2852 = vmatprep.subr.mxu0 %v3653_v3  ;;  %2872 = vmatprep.subr.mxu1 %v3653_v3  ;;  %v2461_v16 = vld [vmem:[%s4395_s1 + $0x38] sm:$0xf]  ;;  %v356_v21 = vld [vmem:[#allocation2 + $0x20] sm:$0xff]  ;;  %v2477_v32 = vld [vmem:[%s4395_s1 + $0x48] sm:$0xff] }
  0x5f   :  { %2853 = vmatpush3.msra.mxu0 %v3653_v3  ;;  %2873 = vmatpush3.msra.mxu1 %v3653_v3  ;;  %v249_v22 = vld [vmem:[#allocation2] sm:$0xff]  ;;  %v2478_v33 = vld [vmem:[%s4395_s1 + $0x50] sm:$0xff]  ;;  %v2479_v34 = vld [vmem:[%s4395_s1 + $0x58] sm:$0xf] }
  0x60   :  { %2854 = vmatprep.subr.mxu0 %v3662_v4  ;;  %2874 = vmatprep.subr.mxu1 %v3662_v4  ;;  %v2476_v31 = vld [vmem:[%s4395_s1 + $0x40] sm:$0xff]  ;;  %v668_v35 = vld [vmem:[#allocation2 + $0x58] sm:$0xf]  ;;  %v667_v36 = vld [vmem:[#allocation2 + $0x50] sm:$0xff] }
  0x61   :  { %2855 = vmatpush3.msra.mxu0 %v3662_v4  ;;  %2875 = vmatpush3.msra.mxu1 %v3662_v4  ;;  %v666_v37 = vld [vmem:[#allocation2 + $0x48] sm:$0xff]  ;;  %v665_v38 = vld [vmem:[#allocation2 + $0x40] sm:$0xff]  ;;  %v889_v48 = vld [vmem:[#allocation5 + $0x10] sm:$0xff] }
  0x62   :  { %2856 = vmatprep.subr.mxu0 %v3671_v5  ;;  %2876 = vmatprep.subr.mxu1 %v3671_v5  ;;  %v788_v47 = vld [vmem:[#allocation5] sm:$0xff] }
  0x63   :  { %2857 = vmatpush3.msra.mxu0 %v3671_v5  ;;  %2877 = vmatpush3.msra.mxu1 %v3671_v5  ;;  %v2489_v62 = vld [vmem:[%s4397_s3] ss:$0 sm:$0xff] }
  0x64   :  { %2858 = vmatprep.subr.mxu0 %v3680_v6  ;;  %2878 = vmatprep.subr.mxu1 %v3680_v6 }
  0x65   :  { %2859 = vmatpush3.msra.mxu0 %v3680_v6  ;;  %2860 = vmatprep.mubr.msk.f32.mxu0 %vm151_vm0, %v147_v7 }
  0x66   :  { %2879 = vmatpush3.msra.mxu1 %v3680_v6  ;;  %2880 = vmatprep.mubr.msk.f32.mxu1 %vm151_vm0, %v2458_v8 }
  0x67   :  { %2861 = vmatmul.mubr.msk.f32.vlgmr.msra.gmra.mxu0 %vm151_vm0, %v148_v9  ;;  %2881 = vmatmul.mubr.msk.f32.vlgmr.msra.gmra.mxu1 %vm151_vm0, %v2459_v10  ;;  %v789_v10 = vld [vmem:[#allocation5 + $0x8] sm:$0x3f] }
  0x68   :  { %2863 = vmatprep.mubr.msk.f32.mxu0 %vm151_vm0, %v149_v11  ;;  %2883 = vmatprep.mubr.msk.f32.mxu1 %vm151_vm0, %v2460_v12  ;;  %v890_v11 = vld [vmem:[#allocation5 + $0x18] sm:$0x3f] }
  0x69   :  { %2886 = vmatprep.subr.msk.mxu0 %vm373_vm1, %v359_v13  ;;  %2900 = vmatprep.subr.msk.mxu1 %vm373_vm1, %v252_v14  ;;  %v2509_v12 = vld [vmem:[%s4399_s5 + $0xd8] sm:$0xff] }
  0x6a   :  { %2887 = vmatpush3.msk.msra.mxu0 %vm373_vm1, %v359_v13  ;;  %2901 = vmatpush3.msk.msra.mxu1 %vm373_vm1, %v252_v14  ;;  %v887_v13 = vld [vmem:[%s4399_s5 + $0x68] sm:$0xff]  ;;  %v2508_v14 = vld [vmem:[%s4399_s5 + $0xd0] sm:$0xff] }
  0x6b   :  { %2864 = vmatmul.mubr.msk.f32.gmra.mxu0 %vm151_vm0, %v150_v15  ;;  %2884 = vmatmul.mubr.msk.f32.gmra.mxu1 %vm151_vm0, %v2461_v16  ;;  %v886_v15 = vld [vmem:[%s4399_s5 + $0x60] sm:$0xff]  ;;  %v2507_v16 = vld [vmem:[%s4399_s5 + $0xc8] sm:$0xff] }
  0x6c   :  { %2888 = vmatprep.subr.mxu0 %v358_v17  ;;  %2902 = vmatprep.subr.mxu1 %v251_v18 }
  0x6d   :  { %2889 = vmatpush3.msra.mxu0 %v358_v17  ;;  %2903 = vmatpush3.msra.mxu1 %v251_v18  ;;  %v885_v17 = vld [vmem:[%s4399_s5 + $0x58] sm:$0xff]  ;;  %v2506_v18 = vld [vmem:[%s4399_s5 + $0xc0] sm:$0xff] }
  0x6e   :  { %2890 = vmatprep.subr.mxu0 %v357_v19  ;;  %2904 = vmatprep.subr.mxu1 %v250_v20 }
  0x6f   :  { %2891 = vmatpush3.msra.mxu0 %v357_v19  ;;  %2905 = vmatpush3.msra.mxu1 %v250_v20  ;;  %v884_v19 = vld [vmem:[%s4399_s5 + $0x50] sm:$0xff]  ;;  %v2505_v20 = vld [vmem:[%s4399_s5 + $0xb8] sm:$0xff] }
  0x70   :  { %2892 = vmatprep.subr.mxu0 %v356_v21  ;;  %2906 = vmatprep.subr.mxu1 %v249_v22 }
  0x71   :  { %2893 = vmatpush3.msra.mxu0 %v356_v21  ;;  %2907 = vmatpush3.msra.mxu1 %v249_v22  ;;  %v883_v21 = vld [vmem:[%s4399_s5 + $0x48] sm:$0xff]  ;;  %v2504_v22 = vld [vmem:[%s4399_s5 + $0xb0] sm:$0xff] }
  0x72   :  { %2914 = vmatprep.subr.mxu0 %v3630_v0  ;;  %2934 = vmatprep.subr.msk.mxu1 %vm373_vm1, %v668_v35 }
 0x127   :  { %v2862_v23 = vpop.f32.mrf.mxu0  ;;  %v2882_v24 = vpop.f32.mrf.mxu1 }
 0x129   :  { %v230_v25 = vpop.f32.mrf.mxu0  ;;  %v336_v26 = vpop.f32.mrf.mxu1 }
 0x12a   :  { %2894 = vmatprep.mubr.msk.f32.mxu0 %vm360_vm2, %v336_v26  ;;  %2908 = vmatprep.mubr.msk.f32.mxu1 %vm360_vm2, %v230_v25  ;;  %v881_v25 = vld [vmem:[%s4399_s5 + $0x38] sm:$0xff]  ;;  %v2502_v26 = vld [vmem:[%s4399_s5 + $0xa0] sm:$0xff] }
 0x12b   :  { %v2865_v27 = vpop.f32.mrf.mxu0  ;;  %v2885_v28 = vpop.f32.mrf.mxu1  ;;  %2895 = vmatmul.mubr.msk.f32.vlgmr.msra.gmra.mxu0 %vm360_vm2, %v2882_v24  ;;  %2909 = vmatmul.mubr.msk.f32.vlgmr.msra.gmra.mxu1 %vm360_vm2, %v2862_v23  ;;  %v882_v23 = vld [vmem:[%s4399_s5 + $0x40] sm:$0xff]  ;;  %v2503_v24 = vld [vmem:[%s4399_s5 + $0xa8] sm:$0xff] }
 0x12c   :  { %2915 = vmatpush3.msra.mxu0 %v3630_v0  ;;  %2935 = vmatpush3.msk.msra.mxu1 %vm373_vm1, %v668_v35  ;;  %v876_v35 = vld [vmem:[%s4399_s5 + $0x10] sm:$0xff] }
 0x12d   :  { %2916 = vmatprep.subr.mxu0 %v3635_v1  ;;  %v240_v29 = vpop.f32.mrf.mxu0  ;;  %v346_v30 = vpop.f32.mrf.mxu1  ;;  %2936 = vmatprep.subr.mxu1 %v667_v36 }
 0x12e   :  { %2917 = vmatpush3.msra.mxu0 %v3635_v1  ;;  %2897 = vmatprep.mubr.msk.f32.mxu0 %vm360_vm2, %v346_v30  ;;  %v2500_v30 = vld [vmem:[%s4399_s5 + $0x90] sm:$0xff] }
 0x12f   :  { %2911 = vmatprep.mubr.msk.f32.mxu1 %vm360_vm2, %v240_v29  ;;  %2918 = vmatprep.subr.mxu0 %v3644_v2  ;;  %v879_v29 = vld [vmem:[%s4399_s5 + $0x28] sm:$0xff] }
 0x130   :  { %2898 = vmatmul.mubr.msk.f32.gmra.mxu0 %vm360_vm2, %v2885_v28  ;;  %2912 = vmatmul.mubr.msk.f32.gmra.mxu1 %vm360_vm2, %v2865_v27  ;;  %v880_v27 = vld [vmem:[%s4399_s5 + $0x30] sm:$0xff]  ;;  %v2501_v28 = vld [vmem:[%s4399_s5 + $0x98] sm:$0xff] }
 0x131   :  { %2919 = vmatpush3.msra.mxu0 %v3644_v2  ;;  %2928 = vmatprep.mubr.msk.f32.mxu0 %vm151_vm0, %v2476_v31  ;;  %v878_v31 = vld [vmem:[%s4399_s5 + $0x20] sm:$0xff] }
 0x132   :  { %2920 = vmatprep.subr.mxu0 %v3653_v3  ;;  %2937 = vmatpush3.msra.mxu1 %v667_v36  ;;  %v2497_v36 = vld [vmem:[%s4399_s5 + $0x78] sm:$0xff] }
 0x133   :  { %2921 = vmatpush3.msra.mxu0 %v3653_v3  ;;  %2938 = vmatprep.subr.mxu1 %v666_v37 }
 0x134   :  { %2922 = vmatprep.subr.mxu0 %v3662_v4  ;;  %2939 = vmatpush3.msra.mxu1 %v666_v37  ;;  %v2496_v37 = vld [vmem:[%s4399_s5 + $0x70] sm:$0xff] }
 0x135   :  { %2923 = vmatpush3.msra.mxu0 %v3662_v4  ;;  %2940 = vmatprep.subr.mxu1 %v665_v38 }
 0x136   :  { %2924 = vmatprep.subr.mxu0 %v3671_v5  ;;  %2941 = vmatpush3.msra.mxu1 %v665_v38  ;;  %v875_v38 = vld [vmem:[%s4399_s5 + $0x8] sm:$0xff] }
 0x137   :  { %2925 = vmatpush3.msra.mxu0 %v3671_v5 }
 0x138   :  { %2926 = vmatprep.subr.mxu0 %v3680_v6 }
 0x139   :  { %2927 = vmatpush3.msra.mxu0 %v3680_v6 }
 0x13a   :  { %2929 = vmatmul.mubr.msk.f32.vlgmr.msra.gmra.mxu0 %vm151_vm0, %v2477_v32  ;;  %v2499_v32 = vld [vmem:[%s4399_s5 + $0x88] sm:$0xff] }
 0x13b   :  { %2931 = vmatprep.mubr.msk.f32.mxu0 %vm151_vm0, %v2478_v33  ;;  %v877_v33 = vld [vmem:[%s4399_s5 + $0x18] sm:$0xff] }
 0x13e   :  { %2932 = vmatmul.mubr.msk.f32.gmra.mxu0 %vm151_vm0, %v2479_v34  ;;  %v2498_v34 = vld [vmem:[%s4399_s5 + $0x80] sm:$0xff] }
 0x13f   :  { %2967 = vmatprep.mubr.msk.f32.mxu0 %vm360_vm2, %v889_v48  ;;  %v2527_v48 = vld [vmem:[%s4399_s5 + $0x130] sm:$0xff] }
 0x1eb   :  { %v2896_v39 = vpop.f32.mrf.mxu0  ;;  %v2910_v49 = vpop.f32.mrf.mxu1 }
 0x1ec   :  { %v549_v55 = vadd.f32 %v2910_v49, %v2896_v39  ;;  %v874_v39 = vld [vmem:[%s4399_s5] sm:$0xff]  ;;  %v1152_v49 = vld [vmem:[#allocation5 + $0x28] sm:$0x3f] }
 0x1ed   :  { %v443_v40 = vpop.f32.mrf.mxu0  ;;  %v543_v50 = vpop.f32.mrf.mxu1 }
 0x1ee   :  { %v544_v58 = vadd.f32 %v543_v50, %v443_v40  ;;  %v2530_v40 = vld [vmem:[%s4399_s5 + $0x148] sm:$0xff] }
 0x1ef   :  { %v2526_v50 = vld [vmem:[%s4399_s5 + $0x128] sm:$0xff] }
 0x1f0   :  { %v2899_v41 = vpop.f32.mrf.mxu0  ;;  %v2913_v51 = vpop.f32.mrf.mxu1 }
 0x1f1   :  { %v559_v56 = vadd.f32 %v2913_v51, %v2899_v41  ;;  %v2525_v51 = vld [vmem:[%s4399_s5 + $0x120] sm:$0xff] }
 0x1f2   :  { %v453_v42 = vpop.f32.mrf.mxu0  ;;  %v553_v52 = vpop.f32.mrf.mxu1 }
 0x1f3   :  { %v554_v59 = vadd.f32 %v553_v52, %v453_v42  ;;  %v2524_v52 = vld [vmem:[%s4399_s5 + $0x118] sm:$0xff] }
 0x1fa   :  { %v2930_v43 = vpop.f32.mrf.mxu0 }
 0x1fc   :  { %v645_v44 = vpop.f32.mrf.mxu0 }
 0x1fd   :  { %2942 = vmatprep.mubr.msk.f32.mxu1 %vm360_vm2, %v645_v44 }
 0x1fe   :  { %v2933_v45 = vpop.f32.mrf.mxu0  ;;  %2943 = vmatmul.mubr.msk.f32.vlgmr.msra.gmra.mxu1 %vm360_vm2, %v2930_v43 }
 0x200   :  { %v655_v46 = vpop.f32.mrf.mxu0 }
 0x201   :  { %2945 = vmatprep.mubr.msk.f32.mxu1 %vm360_vm2, %v655_v46  ;;  %v2529_v46 = vld [vmem:[%s4399_s5 + $0x140] sm:$0xff] }
 0x202   :  { %2946 = vmatmul.mubr.msk.f32.gmra.mxu1 %vm360_vm2, %v2933_v45  ;;  %v1151_v45 = vld [vmem:[#allocation5 + $0x20] sm:$0xff] }
 0x203   :  { %2956 = vmatprep.mubr.msk.f32.mxu1 %vm360_vm2, %v788_v47  ;;  %v2528_v47 = vld [vmem:[%s4399_s5 + $0x138] sm:$0xff] }
 0x2be   :  { %v2944_v53 = vpop.f32.mrf.mxu1 }
 0x2bf   :  { %v770_v60 = vadd.f32 %v2944_v53, %v549_v55  ;;  %v2523_v53 = vld [vmem:[%s4399_s5 + $0x110] sm:$0xff]  ;;  %v2521_v55 = vld [vmem:[%s4399_s5 + $0x100] sm:$0xff] }
 0x2c0   :  { %v750_v54 = vpop.f32.mrf.mxu1 }
 0x2c1   :  { %v769_v0 = vadd.f32 %v750_v54, %v544_v58  ;;  %v781_v3 = vadd.f32 %v2489_v62, %v770_v60  ;;  %v2522_v54 = vld [vmem:[%s4399_s5 + $0x108] sm:$0xff] }
 0x2c2   :  { %v2947_v57 = vpop.f32.mrf.mxu1  ;;  %v2518_v58 = vld [vmem:[%s4399_s5 + $0xe8] sm:$0xff] }
 0x2c3   :  { %v772_v61 = vadd.f32 %v2947_v57, %v559_v56  ;;  %v780_v6 = vadd.f32 %v2489_v62, %v769_v0  ;;  %v3787_v8 = vmax.f32 %v781_v3, 0.0  ;;  %v2520_v56 = vld [vmem:[%s4399_s5 + $0xf8] sm:$0xff]  ;;  %v2519_v57 = vld [vmem:[%s4399_s5 + $0xf0] sm:$0xff]  ;;  %v3514_v0 = vmov 0.0  }
 0x2c4   :  { %v760_v63 = vpop.f32.mrf.mxu1 }
 0x2c5   :  { %v783_v1 = vadd.f32 %v2489_v62, %v772_v61  ;;  %v771_v2 = vadd.f32 %v760_v63, %v554_v59  ;;  %v3793_v9 = vmax.f32 %v780_v6, 0.0  ;;  %v2517_v59 = vld [vmem:[%s4399_s5 + $0xe0] sm:$0xff] }
 0x2c7   :  { %v3775_v4 = vmax.f32 %v783_v1, 0.0  ;;  %v782_v5 = vadd.f32 %v2489_v62, %v771_v2 }
 0x2c9   :  { %v3777_v7 = vmax.f32 %v782_v5, 0.0  ;;  %2948 = vmatprep.subr.msk.mxu1 %vm373_vm1, %v3775_v4  ;;  %2959 = vmatprep.subr.msk.mxu0 %vm373_vm1, %v3775_v4  ;;  %v2533_v5 = vld [vmem:[%s4400_s6] ss:$0 sm:$0xff] }
 0x2ca   :  { %2949 = vmatpush3.msk.msra.mxu1 %vm373_vm1, %v3775_v4  ;;  %2960 = vmatpush3.msk.msra.mxu0 %vm373_vm1, %v3775_v4 }
 0x2cb   :  { %2950 = vmatprep.subr.mxu1 %v3777_v7  ;;  %2961 = vmatprep.subr.mxu0 %v3777_v7 }
 0x2cc   :  { %2951 = vmatpush3.msra.mxu1 %v3777_v7  ;;  %2962 = vmatpush3.msra.mxu0 %v3777_v7 }
 0x2cd   :  { %2952 = vmatprep.subr.mxu1 %v3787_v8  ;;  %2963 = vmatprep.subr.mxu0 %v3787_v8 }
 0x2ce   :  { %2953 = vmatpush3.msra.mxu1 %v3787_v8  ;;  %2964 = vmatpush3.msra.mxu0 %v3787_v8 }
 0x2cf   :  { %2954 = vmatprep.subr.mxu1 %v3793_v9  ;;  %2965 = vmatprep.subr.mxu0 %v3793_v9 }
 0x2d0   :  { %2955 = vmatpush3.msra.mxu1 %v3793_v9  ;;  %2966 = vmatpush3.msra.mxu0 %v3793_v9 }
 0x2d1   :  { %2957 = vmatmul.mubr.msk.f32.vlgmr.msra.gmra.mxu1 %vm360_vm2, %v789_v10  ;;  %2968 = vmatmul.mubr.msk.f32.vlgmr.msra.gmra.mxu0 %vm360_vm2, %v890_v11 }
 0x2d2   :  { %2970 = vmatprep.subr.mxu1 %v2509_v12  ;;  %3001 = vmatprep.subr.mxu0 %v887_v13 }
 0x2d3   :  { %2971 = vmatpush3.msra.mxu1 %v2509_v12  ;;  %3002 = vmatpush3.msra.mxu0 %v887_v13 }
 0x2d4   :  { %2972 = vmatprep.subr.mxu1 %v2508_v14  ;;  %3003 = vmatprep.subr.mxu0 %v886_v15 }
 0x2d5   :  { %2973 = vmatpush3.msra.mxu1 %v2508_v14  ;;  %3004 = vmatpush3.msra.mxu0 %v886_v15  ;;  %v1343_v14 = vld [vmem:[#allocation7] sm:$0x3f]  ;;  %v1437_v15 = vld [vmem:[#allocation7 + $0x8] sm:$0x3f] }
 0x2d6   :  { %2974 = vmatprep.subr.mxu1 %v2507_v16  ;;  %3005 = vmatprep.subr.mxu0 %v885_v17 }
 0x2d7   :  { %2975 = vmatpush3.msra.mxu1 %v2507_v16  ;;  %3006 = vmatpush3.msra.mxu0 %v885_v17  ;;  %v2551_v16 = vld [vmem:[%s4402_s8 + $0xd8] sm:$0xff]  ;;  %v1435_v17 = vld [vmem:[%s4402_s8 + $0x68] sm:$0xff] }
 0x2d8   :  { %2976 = vmatprep.subr.mxu1 %v2506_v18  ;;  %3007 = vmatprep.subr.mxu0 %v884_v19 }
 0x2d9   :  { %2977 = vmatpush3.msra.mxu1 %v2506_v18  ;;  %3008 = vmatpush3.msra.mxu0 %v884_v19  ;;  %v2550_v18 = vld [vmem:[%s4402_s8 + $0xd0] sm:$0xff]  ;;  %v1434_v19 = vld [vmem:[%s4402_s8 + $0x60] sm:$0xff] }
 0x2da   :  { %2978 = vmatprep.subr.mxu1 %v2505_v20  ;;  %3009 = vmatprep.subr.mxu0 %v883_v21 }
 0x2db   :  { %2979 = vmatpush3.msra.mxu1 %v2505_v20  ;;  %3010 = vmatpush3.msra.mxu0 %v883_v21  ;;  %v2549_v20 = vld [vmem:[%s4402_s8 + $0xc8] sm:$0xff]  ;;  %v1433_v21 = vld [vmem:[%s4402_s8 + $0x58] sm:$0xff] }
 0x2dc   :  { %2980 = vmatprep.subr.mxu1 %v2504_v22  ;;  %3011 = vmatprep.subr.mxu0 %v882_v23 }
 0x2dd   :  { %2981 = vmatpush3.msra.mxu1 %v2504_v22  ;;  %3012 = vmatpush3.msra.mxu0 %v882_v23  ;;  %v2548_v22 = vld [vmem:[%s4402_s8 + $0xc0] sm:$0xff]  ;;  %v1432_v23 = vld [vmem:[%s4402_s8 + $0x50] sm:$0xff] }
 0x2de   :  { %2982 = vmatprep.subr.mxu1 %v2503_v24  ;;  %3013 = vmatprep.subr.mxu0 %v881_v25 }
 0x2df   :  { %2983 = vmatpush3.msra.mxu1 %v2503_v24  ;;  %3014 = vmatpush3.msra.mxu0 %v881_v25  ;;  %v2547_v24 = vld [vmem:[%s4402_s8 + $0xb8] sm:$0xff]  ;;  %v1431_v25 = vld [vmem:[%s4402_s8 + $0x48] sm:$0xff] }
 0x2e0   :  { %2984 = vmatprep.subr.mxu1 %v2502_v26  ;;  %3015 = vmatprep.subr.mxu0 %v880_v27 }
 0x2e1   :  { %2985 = vmatpush3.msra.mxu1 %v2502_v26  ;;  %3016 = vmatpush3.msra.mxu0 %v880_v27  ;;  %v2546_v26 = vld [vmem:[%s4402_s8 + $0xb0] sm:$0xff]  ;;  %v1430_v27 = vld [vmem:[%s4402_s8 + $0x40] sm:$0xff] }
 0x2e2   :  { %2986 = vmatprep.subr.mxu1 %v2501_v28  ;;  %3017 = vmatprep.subr.mxu0 %v879_v29 }
 0x2e3   :  { %2987 = vmatpush3.msra.mxu1 %v2501_v28  ;;  %3018 = vmatpush3.msra.mxu0 %v879_v29  ;;  %v2545_v28 = vld [vmem:[%s4402_s8 + $0xa8] sm:$0xff]  ;;  %v1429_v29 = vld [vmem:[%s4402_s8 + $0x38] sm:$0xff] }
 0x2e4   :  { %2988 = vmatprep.subr.mxu1 %v2500_v30  ;;  %3019 = vmatprep.subr.mxu0 %v878_v31 }
 0x2e5   :  { %2989 = vmatpush3.msra.mxu1 %v2500_v30  ;;  %3020 = vmatpush3.msra.mxu0 %v878_v31  ;;  %v2544_v30 = vld [vmem:[%s4402_s8 + $0xa0] sm:$0xff]  ;;  %v1428_v31 = vld [vmem:[%s4402_s8 + $0x30] sm:$0xff] }
 0x2e6   :  { %2990 = vmatprep.subr.mxu1 %v2499_v32  ;;  %3021 = vmatprep.subr.mxu0 %v877_v33 }
 0x2e7   :  { %2991 = vmatpush3.msra.mxu1 %v2499_v32  ;;  %3022 = vmatpush3.msra.mxu0 %v877_v33  ;;  %v2543_v32 = vld [vmem:[%s4402_s8 + $0x98] sm:$0xff]  ;;  %v1427_v33 = vld [vmem:[%s4402_s8 + $0x28] sm:$0xff] }
 0x2e8   :  { %2992 = vmatprep.subr.mxu1 %v2498_v34  ;;  %3023 = vmatprep.subr.mxu0 %v876_v35 }
 0x2e9   :  { %2993 = vmatpush3.msra.mxu1 %v2498_v34  ;;  %3024 = vmatpush3.msra.mxu0 %v876_v35  ;;  %v2542_v34 = vld [vmem:[%s4402_s8 + $0x90] sm:$0xff]  ;;  %v1426_v35 = vld [vmem:[%s4402_s8 + $0x20] sm:$0xff] }
 0x2ea   :  { %2994 = vmatprep.subr.mxu1 %v2497_v36  ;;  %3025 = vmatprep.subr.mxu0 %v875_v38 }
 0x2eb   :  { %2995 = vmatpush3.msra.mxu1 %v2497_v36  ;;  %3026 = vmatpush3.msra.mxu0 %v875_v38  ;;  %v2541_v36 = vld [vmem:[%s4402_s8 + $0x88] sm:$0xff]  ;;  %v2540_v38 = vld [vmem:[%s4402_s8 + $0x80] sm:$0xff] }
 0x2ec   :  { %2996 = vmatprep.subr.mxu1 %v2496_v37  ;;  %3027 = vmatprep.subr.mxu0 %v874_v39 }
 0x2ed   :  { %2997 = vmatpush3.msra.mxu1 %v2496_v37  ;;  %3028 = vmatpush3.msra.mxu0 %v874_v39  ;;  %v1425_v37 = vld [vmem:[%s4402_s8 + $0x18] sm:$0xff]  ;;  %v1424_v39 = vld [vmem:[%s4402_s8 + $0x10] sm:$0xff] }
 0x2ee   :  { %3032 = vmatprep.subr.msk.mxu1 %vm373_vm1, %v3775_v4  ;;  %3043 = vmatprep.subr.mxu0 %v2530_v40 }
 0x391   :  { %v2958_v41 = vpop.f32.mrf.mxu1  ;;  %v2969_v42 = vpop.f32.mrf.mxu0 }
 0x393   :  { %v865_v43 = vpop.f32.mrf.mxu1  ;;  %v963_v44 = vpop.f32.mrf.mxu0 }
 0x394   :  { %2998 = vmatprep.mubr.msk.f32.mxu1 %vm987_vm3, %v963_v44  ;;  %3029 = vmatprep.mubr.msk.f32.mxu0 %vm987_vm3, %v865_v43  ;;  %v1422_v43 = vld [vmem:[%s4402_s8] sm:$0xff] }
 0x395   :  { %2999 = vmatmul.mubr.msk.f32.vlgmr.msra.gmra.mxu1 %vm987_vm3, %v2969_v42  ;;  %3030 = vmatmul.mubr.msk.f32.vlgmr.msra.gmra.mxu0 %vm987_vm3, %v2958_v41  ;;  %v1423_v41 = vld [vmem:[%s4402_s8 + $0x8] sm:$0xff]  ;;  %v2538_v42 = vld [vmem:[%s4402_s8 + $0x70] sm:$0xff] }
 0x396   :  { %3033 = vmatpush3.msk.msra.mxu1 %vm373_vm1, %v3775_v4  ;;  %3040 = vmatprep.mubr.msk.f32.mxu1 %vm360_vm2, %v1151_v45 }
 0x397   :  { %3034 = vmatprep.subr.mxu1 %v3777_v7  ;;  %3044 = vmatpush3.msra.mxu0 %v2530_v40  ;;  %v2539_v40 = vld [vmem:[%s4402_s8 + $0x78] sm:$0xff] }
 0x398   :  { %3035 = vmatpush3.msra.mxu1 %v3777_v7  ;;  %3045 = vmatprep.subr.mxu0 %v2529_v46 }
 0x399   :  { %3036 = vmatprep.subr.mxu1 %v3787_v8  ;;  %3046 = vmatpush3.msra.mxu0 %v2529_v46 }
 0x39a   :  { %3037 = vmatpush3.msra.mxu1 %v3787_v8  ;;  %3047 = vmatprep.subr.mxu0 %v2528_v47 }
 0x39b   :  { %3038 = vmatprep.subr.mxu1 %v3793_v9  ;;  %3048 = vmatpush3.msra.mxu0 %v2528_v47  ;;  %v1673_v47 = vld [vmem:[#allocation7 + $0x10] sm:$0x3f] }
 0x39c   :  { %3039 = vmatpush3.msra.mxu1 %v3793_v9  ;;  %3049 = vmatprep.subr.mxu0 %v2527_v48 }
 0x39d   :  { %3041 = vmatmul.mubr.msk.f32.vlgmr.msra.gmra.mxu1 %vm360_vm2, %v1152_v49  ;;  %3050 = vmatpush3.msra.mxu0 %v2527_v48  ;;  %v2569_v49 = vld [vmem:[%s4402_s8 + $0x148] sm:$0xff] }
 0x39e   :  { %3051 = vmatprep.subr.mxu0 %v2526_v50  ;;  %3081 = vmatprep.subr.mxu1 %v3514_v0 }
 0x39f   :  { %3052 = vmatpush3.msra.mxu0 %v2526_v50  ;;  %3085 = vmatprep.mubr.msk.f32.mxu1 %vm3515_vm4, %v3514_v0  ;;  %v2568_v50 = vld [vmem:[%s4402_s8 + $0x140] sm:$0xff] }
 0x3a0   :  { %3053 = vmatprep.subr.mxu0 %v2525_v51 }
 0x3a1   :  { %3054 = vmatpush3.msra.mxu0 %v2525_v51  ;;  %v2567_v51 = vld [vmem:[%s4402_s8 + $0x138] sm:$0xff] }
 0x3a2   :  { %3055 = vmatprep.subr.mxu0 %v2524_v52 }
 0x3a3   :  { %3056 = vmatpush3.msra.mxu0 %v2524_v52  ;;  %v2566_v52 = vld [vmem:[%s4402_s8 + $0x130] sm:$0xff] }
 0x3a4   :  { %3057 = vmatprep.subr.mxu0 %v2523_v53 }
 0x3a5   :  { %3058 = vmatpush3.msra.mxu0 %v2523_v53  ;;  %v2565_v53 = vld [vmem:[%s4402_s8 + $0x128] sm:$0xff] }
 0x3a6   :  { %3059 = vmatprep.subr.mxu0 %v2522_v54 }
 0x3a7   :  { %3060 = vmatpush3.msra.mxu0 %v2522_v54  ;;  %v2564_v54 = vld [vmem:[%s4402_s8 + $0x120] sm:$0xff] }
 0x3a8   :  { %3061 = vmatprep.subr.mxu0 %v2521_v55 }
 0x3a9   :  { %3062 = vmatpush3.msra.mxu0 %v2521_v55  ;;  %v2563_v55 = vld [vmem:[%s4402_s8 + $0x118] sm:$0xff] }
 0x3aa   :  { %3063 = vmatprep.subr.mxu0 %v2520_v56 }
 0x3ab   :  { %3064 = vmatpush3.msra.mxu0 %v2520_v56  ;;  %v2562_v56 = vld [vmem:[%s4402_s8 + $0x110] sm:$0xff] }
 0x3ac   :  { %3065 = vmatprep.subr.mxu0 %v2519_v57 }
 0x3ad   :  { %3066 = vmatpush3.msra.mxu0 %v2519_v57  ;;  %v2561_v57 = vld [vmem:[%s4402_s8 + $0x108] sm:$0xff] }
 0x3ae   :  { %3067 = vmatprep.subr.mxu0 %v2518_v58 }
 0x3af   :  { %3068 = vmatpush3.msra.mxu0 %v2518_v58  ;;  %v2560_v58 = vld [vmem:[%s4402_s8 + $0x100] sm:$0xff] }
 0x3b0   :  { %3069 = vmatprep.subr.mxu0 %v2517_v59 }
 0x3b1   :  { %3070 = vmatpush3.msra.mxu0 %v2517_v59  ;;  %v2559_v59 = vld [vmem:[%s4402_s8 + $0xf8] sm:$0xff] }
 0x3b2   :  { %3074 = vmatprep.subr.mxu0 %v3514_v0 }
 0x455   :  { %v3000_v60 = vpop.f32.mrf.mxu1  ;;  %v3031_v1 = vpop.f32.mrf.mxu0 }
 0x456   :  { %v1147_v3 = vadd.f32 %v3031_v1, %v3000_v60  ;;  %v2558_v60 = vld [vmem:[%s4402_s8 + $0xf0] sm:$0xff] }
 0x457   :  { %v1060_v61 = vpop.f32.mrf.mxu1  ;;  %v1141_v2 = vpop.f32.mrf.mxu0 }
 0x458   :  { %v1142_v6 = vadd.f32 %v1141_v2, %v1060_v61  ;;  %v2557_v61 = vld [vmem:[%s4402_s8 + $0xe8] sm:$0xff] }
 0x45d   :  { %v3042_v62 = vpop.f32.mrf.mxu1 }
 0x45f   :  { %v1225_v63 = vpop.f32.mrf.mxu1 }
 0x460   :  { %3071 = vmatprep.mubr.msk.f32.mxu0 %vm987_vm3, %v1225_v63 }
 0x461   :  { %3072 = vmatmul.mubr.msk.f32.vlgmr.msra.gmra.mxu0 %vm987_vm3, %v3042_v62  ;;  %v2556_v62 = vld [vmem:[%s4402_s8 + $0xe0] sm:$0xff] }
 0x462   :  { %3078 = vmatprep.mubr.msk.f32.mxu0 %vm3515_vm4, %v3514_v0 }
 0x521   :  { %v3073_v4 = vpop.f32.mrf.mxu0 }
 0x522   :  { %v1331_v7 = vadd.f32 %v3073_v4, %v1147_v3 }
 0x523   :  { %v1321_v8 = vpop.f32.mrf.mxu0 }
 0x524   :  { %v1340_v9 = vadd.f32 %v2533_v5, %v1331_v7  ;;  %v1330_v10 = vadd.f32 %v1321_v8, %v1142_v6  ;;  %v1934_v7 = vld [vmem:[%s4405_s11 + $0x58] sm:$0xff]  ;;  %v1933_v8 = vld [vmem:[%s4405_s11 + $0x50] sm:$0xff] }
 0x526   :  { %v3958_v11 = vmax.f32 %v1340_v9, 0.0  ;;  %v1339_v12 = vadd.f32 %v2533_v5, %v1330_v10  ;;  %v1932_v9 = vld [vmem:[%s4405_s11 + $0x48] sm:$0xff]  ;;  %v1931_v10 = vld [vmem:[%s4405_s11 + $0x40] sm:$0xff] }
 0x528   :  { %v3960_v13 = vmax.f32 %v1339_v12, 0.0  ;;  %3075 = vmatpush3.msk.msra.mxu0 %vm1348_vm5, %v3958_v11  ;;  %3082 = vmatpush3.msk.msra.mxu1 %vm1348_vm5, %v3958_v11  ;;  %v1929_v12 = vld [vmem:[%s4405_s11 + $0x30] sm:$0xff] }
 0x529   :  { %3076 = vmatprep.subr.mxu0 %v3514_v0  ;;  %3083 = vmatprep.subr.mxu1 %v3514_v0 }
 0x52a   :  { %3077 = vmatpush3.msra.mxu0 %v3960_v13  ;;  %3084 = vmatpush3.msra.mxu1 %v3960_v13 }
 0x52b   :  { %3079 = vmatmul.mubr.msk.f32.vlgmr.msra.gmra.mxu0 %vm1344_vm6, %v1343_v14  ;;  %3086 = vmatmul.mubr.msk.f32.vlgmr.msra.gmra.mxu1 %vm1344_vm6, %v1437_v15  ;;  %v1927_v14 = vld [vmem:[%s4405_s11 + $0x20] sm:$0xff]  ;;  %v1926_v15 = vld [vmem:[%s4405_s11 + $0x18] sm:$0xff] }
 0x52c   :  { %3088 = vmatprep.subr.mxu1 %v3514_v0  ;;  %3119 = vmatprep.subr.mxu0 %v3514_v0 }
 0x52d   :  { %3089 = vmatpush3.msra.mxu1 %v2551_v16  ;;  %3120 = vmatpush3.msra.mxu0 %v1435_v17  ;;  %v1925_v16 = vld [vmem:[%s4405_s11 + $0x10] sm:$0xff]  ;;  %v1924_v17 = vld [vmem:[%s4405_s11 + $0x8] sm:$0xff] }
 0x52e   :  { %3090 = vmatprep.subr.mxu1 %v3514_v0  ;;  %3121 = vmatprep.subr.mxu0 %v3514_v0 }
 0x52f   :  { %3091 = vmatpush3.msra.mxu1 %v2550_v18  ;;  %3122 = vmatpush3.msra.mxu0 %v1434_v19  ;;  %v2571_v19 = vld [vmem:[#allocation8] ss:$0 sm:$0xff] }
 0x530   :  { %3092 = vmatprep.subr.mxu1 %v3514_v0  ;;  %3123 = vmatprep.subr.mxu0 %v3514_v0 }
 0x531   :  { %3093 = vmatpush3.msra.mxu1 %v2549_v20  ;;  %3124 = vmatpush3.msra.mxu0 %v1433_v21 }
 0x532   :  { %3094 = vmatprep.subr.mxu1 %v3514_v0  ;;  %3125 = vmatprep.subr.mxu0 %v3514_v0 }
 0x533   :  { %3095 = vmatpush3.msra.mxu1 %v2548_v22  ;;  %3126 = vmatpush3.msra.mxu0 %v1432_v23 }
 0x534   :  { %3096 = vmatprep.subr.mxu1 %v3514_v0  ;;  %3127 = vmatprep.subr.mxu0 %v3514_v0 }
 0x535   :  { %3097 = vmatpush3.msra.mxu1 %v2547_v24  ;;  %3128 = vmatpush3.msra.mxu0 %v1431_v25  ;;  %v1845_v24 = vld [vmem:[#allocation10] sm:$0x3]  ;;  %v1936_v25 = vld [vmem:[#allocation10 + $0x2] sm:$0x3] }
 0x536   :  { %3098 = vmatprep.subr.mxu1 %v3514_v0  ;;  %3129 = vmatprep.subr.mxu0 %v3514_v0 }
 0x537   :  { %3099 = vmatpush3.msra.mxu1 %v2546_v26  ;;  %3130 = vmatpush3.msra.mxu0 %v1430_v27  ;;  %v2587_v26 = vld [vmem:[%s4405_s11 + $0xb8] sm:$0xff]  ;;  %v2586_v27 = vld [vmem:[%s4405_s11 + $0xb0] sm:$0xff] }
 0x538   :  { %3100 = vmatprep.subr.mxu1 %v3514_v0  ;;  %3131 = vmatprep.subr.mxu0 %v3514_v0 }
 0x539   :  { %3101 = vmatpush3.msra.mxu1 %v2545_v28  ;;  %3132 = vmatpush3.msra.mxu0 %v1429_v29  ;;  %v2585_v28 = vld [vmem:[%s4405_s11 + $0xa8] sm:$0xff]  ;;  %v2584_v29 = vld [vmem:[%s4405_s11 + $0xa0] sm:$0xff] }
 0x53a   :  { %3102 = vmatprep.subr.mxu1 %v3514_v0  ;;  %3133 = vmatprep.subr.mxu0 %v3514_v0 }
 0x53b   :  { %3103 = vmatpush3.msra.mxu1 %v2544_v30  ;;  %3134 = vmatpush3.msra.mxu0 %v1428_v31  ;;  %v2583_v30 = vld [vmem:[%s4405_s11 + $0x98] sm:$0xff]  ;;  %v2582_v31 = vld [vmem:[%s4405_s11 + $0x90] sm:$0xff] }
 0x53c   :  { %3104 = vmatprep.subr.mxu1 %v3514_v0  ;;  %3135 = vmatprep.subr.mxu0 %v3514_v0 }
 0x53d   :  { %3105 = vmatpush3.msra.mxu1 %v2543_v32  ;;  %3136 = vmatpush3.msra.mxu0 %v1427_v33  ;;  %v2581_v32 = vld [vmem:[%s4405_s11 + $0x88] sm:$0xff]  ;;  %v2580_v33 = vld [vmem:[%s4405_s11 + $0x80] sm:$0xff] }
 0x53e   :  { %3106 = vmatprep.subr.mxu1 %v3514_v0  ;;  %3137 = vmatprep.subr.mxu0 %v3514_v0 }
 0x53f   :  { %3107 = vmatpush3.msra.mxu1 %v2542_v34  ;;  %3138 = vmatpush3.msra.mxu0 %v1426_v35  ;;  %v2579_v34 = vld [vmem:[%s4405_s11 + $0x78] sm:$0xff]  ;;  %v2578_v35 = vld [vmem:[%s4405_s11 + $0x70] sm:$0xff] }
 0x540   :  { %3108 = vmatprep.subr.mxu1 %v3514_v0  ;;  %3139 = vmatprep.subr.mxu0 %v3514_v0 }
 0x541   :  { %3109 = vmatpush3.msra.mxu1 %v2541_v36  ;;  %3140 = vmatpush3.msra.mxu0 %v1425_v37  ;;  %v2577_v36 = vld [vmem:[%s4405_s11 + $0x68] sm:$0xff]  ;;  %v1923_v37 = vld [vmem:[%s4405_s11] sm:$0xff] }
 0x542   :  { %3110 = vmatprep.subr.mxu1 %v3514_v0  ;;  %3141 = vmatprep.subr.mxu0 %v3514_v0 }
 0x543   :  { %3111 = vmatpush3.msra.mxu1 %v2540_v38  ;;  %3142 = vmatpush3.msra.mxu0 %v1424_v39  ;;  %v2576_v38 = vld [vmem:[%s4405_s11 + $0x60] sm:$0xff] }
 0x544   :  { %3112 = vmatprep.subr.mxu1 %v3514_v0  ;;  %3143 = vmatprep.subr.mxu0 %v3514_v0 }
 0x545   :  { %3113 = vmatpush3.msra.mxu1 %v2539_v40  ;;  %3144 = vmatpush3.msra.mxu0 %v1423_v41 }
 0x546   :  { %3114 = vmatprep.subr.mxu1 %v3514_v0  ;;  %3145 = vmatprep.subr.mxu0 %v3514_v0 }
 0x547   :  { %3115 = vmatpush3.msra.mxu1 %v2538_v42  ;;  %3116 = vmatprep.mubr.msk.f32.mxu1 %vm3515_vm4, %v3514_v0 }
 0x548   :  { %3147 = vmatprep.mubr.msk.f32.mxu0 %vm3515_vm4, %v3514_v0  ;;  %3150 = vmatprep.subr.mxu1 %v3514_v0 }
 0x549   :  { %3146 = vmatpush3.msra.mxu0 %v1422_v43  ;;  %v2171_v43 = vld [vmem:[#allocation10 + $0x4] sm:$0x3] }
 0x54a   :  { %3188 = vmatprep.subr.mxu0 %v3514_v0 }
 0x5eb   :  { %v1418_v44 = vpop.f32.mrf.mxu0  ;;  %v1507_v45 = vpop.f32.mrf.mxu1 }
 0x5ec   :  { %3117 = vmatmul.mubr.msk.f32.vlgmr.msra.gmra.mxu1 %vm987_vm3, %v1507_v45  ;;  %3148 = vmatmul.mubr.msk.f32.vlgmr.msra.gmra.mxu0 %vm987_vm3, %v1418_v44  ;;  %v2603_v44 = vld [vmem:[%s4405_s11 + $0x118] sm:$0xff]  ;;  %v2602_v45 = vld [vmem:[%s4405_s11 + $0x110] sm:$0xff] }
 0x5ed   :  { %3151 = vmatpush3.msk.msra.mxu1 %vm1348_vm5, %v3958_v11  ;;  %v3087_v46 = vpop.f32.mrf.mxu1  ;;  %3154 = vmatprep.mubr.msk.f32.mxu1 %vm3515_vm4, %v3514_v0  ;;  %v3080_v48 = vpop.f32.mrf.mxu0  ;;  %v1930_v11 = vld [vmem:[%s4405_s11 + $0x38] sm:$0xff] }
 0x5ee   :  { %3152 = vmatprep.subr.mxu1 %v3514_v0  ;;  %3190 = vmatprep.mubr.msk.f32.mxu0 %vm3515_vm4, %v3514_v0  ;;  %v2601_v46 = vld [vmem:[%s4405_s11 + $0x108] sm:$0xff]  ;;  %v2599_v48 = vld [vmem:[%s4405_s11 + $0xf8] sm:$0xff] }
 0x5ef   :  { %3153 = vmatpush3.msra.mxu1 %v3960_v13  ;;  %v1928_v13 = vld [vmem:[%s4405_s11 + $0x28] sm:$0xff] }
 0x5f0   :  { %3155 = vmatmul.mubr.msk.f32.vlgmr.msra.gmra.mxu1 %vm1344_vm6, %v1673_v47  ;;  %3157 = vmatprep.subr.mxu1 %v3514_v0  ;;  %v2600_v47 = vld [vmem:[%s4405_s11 + $0x100] sm:$0xff] }
 0x5f1   :  { %3158 = vmatpush3.msra.mxu1 %v2569_v49  ;;  %3185 = vmatprep.mubr.msk.f32.mxu1 %vm3515_vm4, %v3514_v0  ;;  %v2598_v49 = vld [vmem:[%s4405_s11 + $0xf0] sm:$0xff] }
 0x5f2   :  { %3159 = vmatprep.subr.mxu1 %v3514_v0 }
 0x5f3   :  { %3160 = vmatpush3.msra.mxu1 %v2568_v50  ;;  %v2597_v50 = vld [vmem:[%s4405_s11 + $0xe8] sm:$0xff] }
 0x5f4   :  { %3161 = vmatprep.subr.mxu1 %v3514_v0 }
 0x5f5   :  { %3162 = vmatpush3.msra.mxu1 %v2567_v51  ;;  %v2596_v51 = vld [vmem:[%s4405_s11 + $0xe0] sm:$0xff] }
 0x5f6   :  { %3163 = vmatprep.subr.mxu1 %v3514_v0 }
 0x5f7   :  { %3164 = vmatpush3.msra.mxu1 %v2566_v52  ;;  %v2595_v52 = vld [vmem:[%s4405_s11 + $0xd8] sm:$0xff] }
 0x5f8   :  { %3165 = vmatprep.subr.mxu1 %v3514_v0 }
 0x5f9   :  { %3166 = vmatpush3.msra.mxu1 %v2565_v53  ;;  %v2594_v53 = vld [vmem:[%s4405_s11 + $0xd0] sm:$0xff] }
 0x5fa   :  { %3167 = vmatprep.subr.mxu1 %v3514_v0 }
 0x5fb   :  { %3168 = vmatpush3.msra.mxu1 %v2564_v54  ;;  %v2593_v54 = vld [vmem:[%s4405_s11 + $0xc8] sm:$0xff] }
 0x5fc   :  { %3169 = vmatprep.subr.mxu1 %v3514_v0 }
 0x5fd   :  { %3170 = vmatpush3.msra.mxu1 %v2563_v55  ;;  %v2592_v55 = vld [vmem:[%s4405_s11 + $0xc0] sm:$0xff] }
 0x5fe   :  { %3171 = vmatprep.subr.mxu1 %v3514_v0 }
 0x5ff   :  { %3172 = vmatpush3.msra.mxu1 %v2562_v56  ;;  %v2356_v56 = vld [vmem:[%s4407_s13 + $0x78] sm:$0xff] }
 0x600   :  { %3173 = vmatprep.subr.mxu1 %v3514_v0 }
 0x601   :  { %3174 = vmatpush3.msra.mxu1 %v2561_v57  ;;  %v2355_v57 = vld [vmem:[%s4407_s13 + $0x70] sm:$0xff] }
 0x602   :  { %3175 = vmatprep.subr.mxu1 %v3514_v0 }
 0x603   :  { %3176 = vmatpush3.msra.mxu1 %v2560_v58  ;;  %v2354_v58 = vld [vmem:[%s4407_s13 + $0x68] sm:$0xff] }
 0x604   :  { %3177 = vmatprep.subr.mxu1 %v3514_v0 }
 0x605   :  { %3178 = vmatpush3.msra.mxu1 %v2559_v59  ;;  %v2353_v59 = vld [vmem:[%s4407_s13 + $0x60] sm:$0xff] }
 0x606   :  { %3179 = vmatprep.subr.mxu1 %v3514_v0 }
 0x607   :  { %3180 = vmatpush3.msra.mxu1 %v2558_v60  ;;  %v2352_v60 = vld [vmem:[%s4407_s13 + $0x58] sm:$0xff] }
 0x608   :  { %3181 = vmatprep.subr.mxu1 %v3514_v0 }
 0x609   :  { %3182 = vmatpush3.msra.mxu1 %v2557_v61  ;;  %v2351_v61 = vld [vmem:[%s4407_s13 + $0x50] sm:$0xff] }
 0x60a   :  { %3183 = vmatprep.subr.mxu1 %v3514_v0 }
 0x60b   :  { %3184 = vmatpush3.msra.mxu1 %v2556_v62  ;;  %v2350_v62 = vld [vmem:[%s4407_s13 + $0x48] sm:$0xff] }
 0x60c   :  { %3225 = vmatprep.subr.mxu1 %v3514_v0 }
 0x6ac   :  { %v1595_v63 = vpop.f32.mrf.mxu1  ;;  %v1668_v1 = vpop.f32.mrf.mxu0 }
 0x6ad   :  { %v1669_v2 = vadd.f32 %v1668_v1, %v1595_v63  ;;  %v2349_v63 = vld [vmem:[%s4407_s13 + $0x40] sm:$0xff]  ;;  %v2348_v1 = vld [vmem:[%s4407_s13 + $0x38] sm:$0xff] }
 0x6ae   :  { %v3118_v3 = vpop.f32.mrf.mxu1  ;;  %v3149_v4 = vpop.f32.mrf.mxu0 }
 0x6af   :  { %v2346_v3 = vld [vmem:[%s4407_s13 + $0x28] sm:$0xff]  ;;  %v2345_v4 = vld [vmem:[%s4407_s13 + $0x20] sm:$0xff] }
 0x6b0   :  { %v1743_v5 = vpop.f32.mrf.mxu1 }
 0x6b1   :  { %3186 = vmatmul.mubr.msk.f32.vlgmr.msra.gmra.mxu1 %vm987_vm3, %v1743_v5 }
 0x6b2   :  { %v3156_v6 = vpop.f32.mrf.mxu1  ;;  %3249 = vmatprep.mubr.msk.f32.mxu1 %vm3515_vm4, %v3514_v0  ;;  %3226 = vmatpush3.msra.mxu1 %v1934_v7 }
 0x6b3   :  { %3227 = vmatprep.subr.mxu1 %v3514_v0 }
 0x6b4   :  { %3228 = vmatpush3.msra.mxu1 %v1933_v8 }
 0x6b5   :  { %3229 = vmatprep.subr.mxu1 %v3514_v0 }
 0x6b6   :  { %3230 = vmatpush3.msra.mxu1 %v1932_v9 }
 0x6b7   :  { %3231 = vmatprep.subr.mxu1 %v3514_v0 }
 0x6b8   :  { %3232 = vmatpush3.msra.mxu1 %v1931_v10 }
 0x6b9   :  { %3233 = vmatprep.subr.mxu1 %v3514_v0 }
 0x6ba   :  { %3234 = vmatpush3.msra.mxu1 %v1930_v11 }
 0x6bb   :  { %3235 = vmatprep.subr.mxu1 %v3514_v0 }
 0x6bc   :  { %3236 = vmatpush3.msra.mxu1 %v1929_v12  ;;  %v2344_v12 = vld [vmem:[%s4407_s13 + $0x18] sm:$0xff] }
 0x6bd   :  { %3237 = vmatprep.subr.mxu1 %v3514_v0 }
 0x6be   :  { %3238 = vmatpush3.msra.mxu1 %v1928_v13  ;;  %v2343_v13 = vld [vmem:[%s4407_s13 + $0x10] sm:$0xff] }
 0x6bf   :  { %3239 = vmatprep.subr.mxu1 %v3514_v0 }
 0x6c0   :  { %3240 = vmatpush3.msra.mxu1 %v1927_v14  ;;  %v2342_v14 = vld [vmem:[%s4407_s13 + $0x8] sm:$0xff] }
 0x6c1   :  { %3241 = vmatprep.subr.mxu1 %v3514_v0 }
 0x6c2   :  { %3242 = vmatpush3.msra.mxu1 %v1926_v15  ;;  %v2341_v15 = vld [vmem:[%s4407_s13] sm:$0xff] }
 0x6c3   :  { %3243 = vmatprep.subr.mxu1 %v3514_v0 }
 0x6c4   :  { %3244 = vmatpush3.msra.mxu1 %v1925_v16 }
 0x6c5   :  { %3245 = vmatprep.subr.mxu1 %v3514_v0 }
 0x6c6   :  { %3246 = vmatpush3.msra.mxu1 %v1924_v17  ;;  %v2605_v17 = vld [vmem:[#allocation11] ss:$0 sm:$0xff] }
 0x6c7   :  { %3247 = vmatprep.subr.mxu1 %v3514_v0 }
 0x6c8   :  { %3248 = vmatpush3.msra.mxu1 %v1923_v37 }
 0x6c9   :  { %3284 = vmatprep.subr.mxu1 %v3514_v0 }
 0x771   :  { %v1831_v18 = vpop.f32.mrf.mxu1 }
 0x772   :  { %v1835_v20 = vadd.f32 %v1831_v18, %v1669_v2  ;;  %v2347_v2 = vld [vmem:[%s4407_s13 + $0x30] sm:$0xff]  ;;  %s3473_s13 = scalar_lea.vmem %s2443_s7, 32 }
 0x773   :  { %v3187_v21 = vpop.f32.mrf.mxu1  ;;  %p3474_p7 = scmp.ne.s32.totalorder %s2443_s7, %s3473_s13  ;;  %p3479_p9 = scmp.lt.s32.totalorder %s3473_s13, %s3473_s13 }
 0x774   :  { %v1843_v22 = vadd.f32 %v2571_v19, %v1835_v20 }
 0x775   :  { %p3480_p10 = por %p3479_p9, %p3478_p8 }
 0x776   :  { %v1844_v23 = vmax.f32 %v1843_v22, 0.0  ;;  %v2606_v22 = vld [vmem:[#allocation13] ss:$0 sm:$0xff] }
 0x777   :  { %p3481_p11 = pnand %p3480_p10, %p3474_p7 }
 0x778   :  { %3189 = vmatpush3.msk.msra.mxu0 %vm1348_vm5, %v1844_v23 }
 0x779   :  { %3191 = vmatmul.mubr.msk.f32.vlgmr.msra.gmra.mxu0 %vm1846_vm7, %v1845_v24  ;;  %3193 = vmatprep.subr.mxu0 %v3514_v0 }
 0x77a   :  { %3194 = vmatpush3.msk.msra.mxu0 %vm1348_vm5, %v1844_v23  ;;  %3195 = vmatprep.mubr.msk.f32.mxu0 %vm3515_vm4, %v3514_v0 }
 0x77b   :  { %3198 = vmatprep.subr.mxu0 %v3514_v0 }
 0x77d   :  { %3196 = vmatmul.mubr.msk.f32.vlgmr.msra.gmra.mxu0 %vm1846_vm7, %v1936_v25 }
 0x77e   :  { %3199 = vmatpush3.msra.mxu0 %v2587_v26  ;;  %3222 = vmatprep.mubr.msk.f32.mxu0 %vm3515_vm4, %v3514_v0 }
 0x77f   :  { %3200 = vmatprep.subr.mxu0 %v3514_v0 }
 0x780   :  { %3201 = vmatpush3.msra.mxu0 %v2586_v27 }
 0x781   :  { %3202 = vmatprep.subr.mxu0 %v3514_v0 }
 0x782   :  { %3203 = vmatpush3.msra.mxu0 %v2585_v28 }
 0x783   :  { %3204 = vmatprep.subr.mxu0 %v3514_v0 }
 0x784   :  { %3205 = vmatpush3.msra.mxu0 %v2584_v29 }
 0x785   :  { %3206 = vmatprep.subr.mxu0 %v3514_v0 }
 0x786   :  { %3207 = vmatpush3.msra.mxu0 %v2583_v30 }
 0x787   :  { %3208 = vmatprep.subr.mxu0 %v3514_v0 }
 0x788   :  { %3209 = vmatpush3.msra.mxu0 %v2582_v31 }
 0x789   :  { %3210 = vmatprep.subr.mxu0 %v3514_v0 }
 0x78a   :  { %3211 = vmatpush3.msra.mxu0 %v2581_v32 }
 0x78b   :  { %3212 = vmatprep.subr.mxu0 %v3514_v0 }
 0x78c   :  { %3213 = vmatpush3.msra.mxu0 %v2580_v33 }
 0x78d   :  { %3214 = vmatprep.subr.mxu0 %v3514_v0 }
 0x78e   :  { %3215 = vmatpush3.msra.mxu0 %v2579_v34 }
 0x78f   :  { %3216 = vmatprep.subr.mxu0 %v3514_v0 }
 0x790   :  { %3217 = vmatpush3.msra.mxu0 %v2578_v35 }
 0x791   :  { %3218 = vmatprep.subr.mxu0 %v3514_v0 }
 0x792   :  { %3219 = vmatpush3.msra.mxu0 %v2577_v36 }
 0x793   :  { %3220 = vmatprep.subr.mxu0 %v3514_v0 }
 0x794   :  { %3221 = vmatpush3.msra.mxu0 %v2576_v38 }
 0x795   :  { %3252 = vmatprep.subr.mxu0 %v3514_v0 }
 0x839   :  { %v1919_v39 = vpop.f32.mrf.mxu0 }
 0x83a   :  { %3250 = vmatmul.mubr.msk.f32.vlgmr.msra.gmra.mxu1 %vm2023_vm8, %v1919_v39 }
 0x83b   :  { %v3192_v40 = vpop.f32.mrf.mxu0  ;;  %3316 = vmatprep.mubr.msk.f32.mxu1 %vm3515_vm4, %v3514_v0  ;;  %3285 = vmatpush3.msra.mxu1 %v2356_v56 }
 0x83c   :  { %3286 = vmatprep.subr.mxu1 %v3514_v0 }
 0x83d   :  { %v2006_v41 = vpop.f32.mrf.mxu0  ;;  %3287 = vmatpush3.msra.mxu1 %v2355_v57 }
 0x83e   :  { %3223 = vmatmul.mubr.msk.f32.vlgmr.msra.gmra.mxu0 %vm2023_vm8, %v2006_v41  ;;  %3288 = vmatprep.subr.mxu1 %v3514_v0 }
 0x83f   :  { %3253 = vmatpush3.msk.msra.mxu0 %vm1348_vm5, %v1844_v23  ;;  %v3197_v42 = vpop.f32.mrf.mxu0  ;;  %3254 = vmatprep.mubr.msk.f32.mxu0 %vm3515_vm4, %v3514_v0 }
 0x840   :  { %3257 = vmatprep.subr.mxu0 %v3514_v0  ;;  %3289 = vmatpush3.msra.mxu1 %v2354_v58 }
 0x841   :  { %3290 = vmatprep.subr.mxu1 %v3514_v0 }
 0x842   :  { %3255 = vmatmul.mubr.msk.f32.vlgmr.msra.gmra.mxu0 %vm1846_vm7, %v2171_v43  ;;  %3291 = vmatpush3.msra.mxu1 %v2353_v59 }
 0x843   :  { %3258 = vmatpush3.msra.mxu0 %v2603_v44  ;;  %3281 = vmatprep.mubr.msk.f32.mxu0 %vm3515_vm4, %v3514_v0 }
 0x844   :  { %3259 = vmatprep.subr.mxu0 %v3514_v0  ;;  %3292 = vmatprep.subr.mxu1 %v3514_v0 }
 0x845   :  { %3260 = vmatpush3.msra.mxu0 %v2602_v45  ;;  %3293 = vmatpush3.msra.mxu1 %v2352_v60 }
 0x846   :  { %3261 = vmatprep.subr.mxu0 %v3514_v0  ;;  %3294 = vmatprep.subr.mxu1 %v3514_v0 }
 0x847   :  { %3262 = vmatpush3.msra.mxu0 %v2601_v46  ;;  %3295 = vmatpush3.msra.mxu1 %v2351_v61 }
 0x848   :  { %3263 = vmatprep.subr.mxu0 %v3514_v0  ;;  %3296 = vmatprep.subr.mxu1 %v3514_v0 }
 0x849   :  { %3264 = vmatpush3.msra.mxu0 %v2600_v47  ;;  %3297 = vmatpush3.msra.mxu1 %v2350_v62 }
 0x84a   :  { %3265 = vmatprep.subr.mxu0 %v3514_v0  ;;  %3298 = vmatprep.subr.mxu1 %v3514_v0 }
 0x84b   :  { %3266 = vmatpush3.msra.mxu0 %v2599_v48  ;;  %3299 = vmatpush3.msra.mxu1 %v2349_v63 }
 0x84c   :  { %3267 = vmatprep.subr.mxu0 %v3514_v0  ;;  %3300 = vmatprep.subr.mxu1 %v3514_v0 }
 0x84d   :  { %3268 = vmatpush3.msra.mxu0 %v2598_v49  ;;  %3301 = vmatpush3.msra.mxu1 %v2348_v1 }
 0x84e   :  { %3269 = vmatprep.subr.mxu0 %v3514_v0  ;;  %3302 = vmatprep.subr.mxu1 %v3514_v0 }
 0x84f   :  { %3270 = vmatpush3.msra.mxu0 %v2597_v50  ;;  %3303 = vmatpush3.msra.mxu1 %v2347_v2 }
 0x850   :  { %3271 = vmatprep.subr.mxu0 %v3514_v0  ;;  %3304 = vmatprep.subr.mxu1 %v3514_v0 }
 0x851   :  { %3272 = vmatpush3.msra.mxu0 %v2596_v51  ;;  %3305 = vmatpush3.msra.mxu1 %v2346_v3 }
 0x852   :  { %3273 = vmatprep.subr.mxu0 %v3514_v0  ;;  %3306 = vmatprep.subr.mxu1 %v3514_v0 }
 0x853   :  { %3274 = vmatpush3.msra.mxu0 %v2595_v52  ;;  %3307 = vmatpush3.msra.mxu1 %v2345_v4 }
 0x854   :  { %3275 = vmatprep.subr.mxu0 %v3514_v0  ;;  %3308 = vmatprep.subr.mxu1 %v3514_v0 }
 0x855   :  { %3276 = vmatpush3.msra.mxu0 %v2594_v53  ;;  %3309 = vmatpush3.msra.mxu1 %v2344_v12 }
 0x856   :  { %3277 = vmatprep.subr.mxu0 %v3514_v0  ;;  %3310 = vmatprep.subr.mxu1 %v3514_v0 }
 0x857   :  { %3278 = vmatpush3.msra.mxu0 %v2593_v54  ;;  %3311 = vmatpush3.msra.mxu1 %v2343_v13 }
 0x858   :  { %3279 = vmatprep.subr.mxu0 %v3514_v0  ;;  %3312 = vmatprep.subr.mxu1 %v3514_v0 }
 0x859   :  { %3280 = vmatpush3.msra.mxu0 %v2592_v55  ;;  %3313 = vmatpush3.msra.mxu1 %v2342_v14 }
 0x85a   :  { %3314 = vmatprep.subr.mxu1 %v3514_v0 }
 0x85b   :  { %3315 = vmatpush3.msra.mxu1 %v2341_v15 }
 0x8fa   :  { %v2166_v5 = vpop.f32.mrf.mxu1 }
 0x8fc   :  { %v3251_v6 = vpop.f32.mrf.mxu1 }
 0x8fe   :  { %v2093_v7 = vpop.f32.mrf.mxu0 }
 0x8ff   :  { %v2167_v8 = vadd.f32 %v2166_v5, %v2093_v7 }
 0x900   :  { %v3224_v9 = vpop.f32.mrf.mxu0 }
 0x902   :  { %v2241_v10 = vpop.f32.mrf.mxu0 }
 0x903   :  { %3282 = vmatmul.mubr.msk.f32.vlgmr.msra.gmra.mxu0 %vm2023_vm8, %v2241_v10 }
 0x904   :  { %v3256_v11 = vpop.f32.mrf.mxu0 }
 0x9c3   :  { %v2327_v16 = vpop.f32.mrf.mxu0 }
 0x9c4   :  { %v2331_v18 = vadd.f32 %v2327_v16, %v2167_v8 }
 0x9c5   :  { %v3283_v19 = vpop.f32.mrf.mxu0 }
 0x9c6   :  { %v2339_v20 = vadd.f32 %v2605_v17, %v2331_v18 }
 0x9c8   :  { %v2340_v21 = vmax.f32 %v2339_v20, 0.0 }
 0x9ca   :  { %3317 = vmatmul.mubr.f32.vlgmr.msra.gmra.mxu1 %v2340_v21 }
 0xa8a   :  { %v2430_v23 = vpop.f32.mrf.mxu1 }
 0xa8b   :  { %v2431_v24 = vadd.f32 %v2606_v22, %v2430_v23 }
 0xa8c   :  { %v3318_v25 = vpop.f32.mrf.mxu1 }
 0xa8d   :  { %2435 = vst.msk [vmem:[#allocation14] sm:$0x3] %vm2434_vm9, %v2431_v24 }
 0xa8e   :  { %3484 = shalt.err (!%p3481_p11)
}
 0xa8f   :  { %2445 = dma.vmem_to_hbm [thread:$0]  %s2443_s7, 32, %s4409_s15, [#allocation4]  }
 0xa90   :  { %3501 = dma.done.wait [#allocation4], 32  }
 0xa91   :  { %3502 = vsyncadd [#allocation4], 4294967264 }
 0xa92   :  { %2449 = vsyncpa [#allocation3], 1 }
 0xa93   :  { %2450 = vsyncpa [#allocation6], 1 }
 0xa94   :  { %2451 = vsyncpa [#allocation9], 1 }
 0xa95   :  { %2452 = vsyncpa [#allocation12], 1 }
 0xa96   :  { %2453 = vsyncpa [#allocation4], 1 }

</bundles_post_ra>
